<compile_context>
chip_gen: v7x
topology: tpu7x:2x2x1
jax: 0.10.0
libtpu: 0.0.40
codegen_flags: <defaults>
</compile_context>

<pallas_src>
import numpy as np
import jax
import jax.numpy as jnp
from jax.experimental import pallas as pl
from jax.experimental.pallas import tpu as pltpu

# ---------------- configuration (BaseTransform __init__ arguments) ----------------
IN_CHANNELS = 4          # stored by the module but unused (get_cam_feats is abstract)
OUT_CHANNELS = 8         # C
IMAGE_SIZE = (16, 16)    # (iH, iW)
FEATURE_SIZE = (8, 8)    # (fH, fW)
XBOUND = (-40.0, 40.0, 10.0)
YBOUND = (-40.0, 40.0, 10.0)
ZBOUND = (-20.0, 20.0, 20.0)
DBOUND = (1.0, 5.0, 1.0)
B = 2                    # batch
N_CAMS = 2               # cameras per sample


def gen_dx_bx(xbound, ybound, zbound):
    dx = np.array([row[2] for row in (xbound, ybound, zbound)], dtype=np.float32)
    bx = np.array([row[0] + row[2] / 2.0 for row in (xbound, ybound, zbound)],
                  dtype=np.float32)
    nx = np.array([(row[1] - row[0]) / row[2] for row in (xbound, ybound, zbound)],
                  dtype=np.int64)
    return dx, bx, nx


def create_frustum(image_size, feature_size, dbound):
    iH, iW = image_size
    fH, fW = feature_size
    ds = np.arange(dbound[0], dbound[1], dbound[2], dtype=np.float32)      # (D,)
    D = ds.shape[0]
    xs = np.linspace(0.0, iW - 1, fW, dtype=np.float32)
    ys = np.linspace(0.0, iH - 1, fH, dtype=np.float32)
    xs_b = np.broadcast_to(xs[None, None, :], (D, fH, fW))
    ys_b = np.broadcast_to(ys[None, :, None], (D, fH, fW))
    ds_b = np.broadcast_to(ds[:, None, None], (D, fH, fW))
    return np.stack([xs_b, ys_b, ds_b], axis=-1).astype(np.float32)        # (D,fH,fW,3)


# ---------------- deterministic module "parameters" ----------------
DX, BX, NX_ARR = gen_dx_bx(XBOUND, YBOUND, ZBOUND)
SHIFT = (BX - DX / 2.0).astype(np.float32)          # bx - dx/2  (grid origin)
NX, NY, NZ = int(NX_ARR[0]), int(NX_ARR[1]), int(NX_ARR[2])
FRUSTUM = create_frustum(IMAGE_SIZE, FEATURE_SIZE, DBOUND)   # (D, fH, fW, 3)
D_BINS, FH, FW, _ = FRUSTUM.shape
PPC = D_BINS * FH * FW          # points per camera (256)
BN = B * N_CAMS                 # cameras total (4)
BN_PAD = 8                      # pad camera axis to a full sublane group
K = BN * PPC                    # total points across cameras (1024)
CELLS_PER_BATCH = NZ * NX * NY  # voxels per sample (128)
NCELLS = B * CELLS_PER_BATCH    # flattened BEV cells, ordered (b, z, x, y) (256)
C = OUT_CHANNELS
SENTINEL = 2 ** 30              # voxel index that can never match any cell

# per-camera parameter packing: [img2lidar row-major (16), tx, ty, tz, scale]
IDX_TX, IDX_TY, IDX_TZ, IDX_SCALE = 16, 17, 18, 19
NPARAMS = 20


def _detect_tile_n():
    """Cells per grid step: full width on single-TC chips, half on 2-TC v7x."""
    try:
        kind = jax.devices()[0].device_kind.lower()
    except Exception:
        kind = ""
    if "v7" in kind or "7x" in kind:
        return 128          # 2 "parallel" tiles -> one per TensorCore
    return NCELLS           # single lane-dense tile, no per-step overhead


TILE_N = _detect_tile_n()
assert NCELLS % TILE_N == 0 and TILE_N % 128 == 0


# ---------------- Pallas kernel 1: one-shot geometry / voxelization ----------------
def _geometry_kernel(frustum_ref, params_ref, lin_ref):
    # frustum_ref: (3, PPC)          coordinate-major frustum rows (x / y / depth)
    # params_ref:  (BN_PAD, NPARAMS) per-camera [img2lidar(16), trans(3), scale(1)]
    # lin_ref:     (PPC, BN_PAD)     int32 voxel index per (point, camera), no batch offset
    prm = params_ref[...]

    def col(k):                                        # (BN_PAD, 1) per-camera column
        return prm[:, k:k + 1]

    fx = frustum_ref[0:1, :]                           # (1, PPC)
    fy = frustum_ref[1:2, :]
    fd = frustum_ref[2:3, :]

    # --- get_geometry (eval): all cameras at once, shape (BN_PAD, PPC) ---
    s = col(IDX_SCALE)
    x = (fx + col(IDX_TX)) / s                         # points += trans ; xy /= scale
    y = (fy + col(IDX_TY)) / s
    d = fd + col(IDX_TZ)
    px = x * d
    py = y * d
    m = [col(k) for k in range(12)]                    # img2lidar rows 0..2 (4x4 row-major)
    lx = m[0] * px + m[1] * py + m[2] * d + m[3]
    ly = m[4] * px + m[5] * py + m[6] * d + m[7]
    lz = m[8] * px + m[9] * py + m[10] * d + m[11]

    # --- voxelize: ((p - (bx - dx/2)) / dx).long()  (exact f32 div, trunc toward zero) ---
    vx = ((lx - SHIFT[0]) / DX[0]).astype(jnp.int32)
    vy = ((ly - SHIFT[1]) / DX[1]).astype(jnp.int32)
    vz = ((lz - SHIFT[2]) / DX[2]).astype(jnp.int32)
    kept = ((vx >= 0) & (vx < NX) & (vy >= 0) & (vy < NY)
            & (vz >= 0) & (vz < NZ))
    # padded camera rows (>= BN) must never contribute to any real cell
    row = jax.lax.broadcasted_iota(jnp.int32, (BN_PAD, PPC), 0)
    kept = kept & (row < BN)
    lin = (vz * NX + vx) * NY + vy                     # per-camera batch offset added later
    lin = jnp.where(kept, lin, SENTINEL)
    lin_ref[...] = lin.T                               # (PPC, BN_PAD): points on sublanes


# ---------------- Pallas kernel 2: BEV sum-pool via per-camera one-hot matmuls ----------------
def _bev_pool_kernel(lin_ref, feats_ref, out_ref):
    # lin_ref:   (PPC, BN_PAD) int32  voxel index per (point, camera)
    # feats_ref: (C, K)        f32    camera features, channels on sublanes
    # out_ref:   (C, TILE_N)   f32    pooled BEV features for this cell tile
    tile = pl.program_id(0)
    cells = tile * TILE_N + jax.lax.broadcasted_iota(jnp.int32, (1, TILE_N), 1)

    acc = jnp.zeros((C, TILE_N), jnp.float32)
    for c in range(BN):                                # static unroll over cameras
        batch_off = (c // N_CAMS) * CELLS_PER_BATCH    # compile-time constant per camera
        onehot = (lin_ref[:, c:c + 1] == (cells - batch_off)).astype(jnp.float32)
        # scatter-add over voxels == one-hot matmul on the MXU (per camera, K-slice is a
        # zero-cost static view of the resident feats block)
        acc = acc + jnp.dot(feats_ref[:, c * PPC:(c + 1) * PPC], onehot,
                            preferred_element_type=jnp.float32)
    out_ref[...] = acc                                 # single lane-dense store


@jax.jit
def base_transform_forward(cam_feats, img_translation, img_scale, lidar2img):
    """BaseTransform.forward (eval mode).

    cam_feats:       (B, N, D, fH, fW, C)  -- stand-in for get_cam_feats(img)
    img_translation: (B, N, 3)
    img_scale:       (B, N)
    lidar2img:       (B, N, 4, 4)
    returns:         (B, C*NZ, NX, NY)
    """
    img2lidar = jnp.linalg.inv(lidar2img.astype(jnp.float32))   # glue: 4x4 per camera
    params = jnp.concatenate(
        [img2lidar.reshape(BN, 16),
         img_translation.reshape(BN, 3).astype(jnp.float32),
         img_scale.reshape(BN, 1).astype(jnp.float32)], axis=-1)        # (BN, 20)
    params_pad = jnp.zeros((BN_PAD, NPARAMS), jnp.float32).at[:BN].set(params)
    params_pad = params_pad.at[BN:, IDX_SCALE].set(1.0)   # dummy rows: avoid 0-div

    frustum_cm = jnp.asarray(np.ascontiguousarray(FRUSTUM.reshape(PPC, 3).T))  # (3, PPC)
    # channels-on-sublanes, points-on-lanes: fully lane-dense VMEM layout
    feats_t = cam_feats.reshape(K, C).astype(jnp.float32).T                    # (C, K)

    # --- prologue: geometry + voxel indices computed exactly once ---
    lin_t = pl.pallas_call(
        _geometry_kernel,
        out_shape=jax.ShapeDtypeStruct((PPC, BN_PAD), jnp.int32),
        grid_spec=pltpu.PrefetchScalarGridSpec(
            num_scalar_prefetch=0,
            grid=(1,),
            in_specs=[
                pl.BlockSpec((3, PPC), lambda i: (0, 0)),            # frustum
                pl.BlockSpec((BN_PAD, NPARAMS), lambda i: (0, 0)),   # per-camera params
            ],
            out_specs=pl.BlockSpec((PPC, BN_PAD), lambda i: (0, 0)),
        ),
        compiler_params=pltpu.CompilerParams(
            dimension_semantics=("arbitrary",)),
    )(frustum_cm, params_pad)

    # --- BEV pooling: cell-tiled, per-camera one-hot MXU accumulation ---
    pooled = pl.pallas_call(
        _bev_pool_kernel,
        out_shape=jax.ShapeDtypeStruct((C, NCELLS), jnp.float32),
        grid_spec=pltpu.PrefetchScalarGridSpec(
            num_scalar_prefetch=0,
            grid=(NCELLS // TILE_N,),
            in_specs=[
                pl.BlockSpec((PPC, BN_PAD), lambda i: (0, 0)),       # voxel indices
                pl.BlockSpec((C, K), lambda i: (0, 0)),              # features
            ],
            out_specs=pl.BlockSpec((C, TILE_N), lambda i: (0, i)),
        ),
        compiler_params=pltpu.CompilerParams(
            dimension_semantics=("parallel",)),
    )(lin_t, feats_t)

    # bev_pool returns (B, C, Z, X, Y); torch.cat(x.unbind(dim=2), 1) -> (B, Z*C, X, Y)
    out = pooled.T.reshape(B, NZ, NX, NY, C).transpose(0, 1, 4, 2, 3)
    return out.reshape(B, NZ * C, NX, NY)


# ---------------- pure-JAX reference (mirrors the PyTorch code) ----------------
def reference_forward(cam_feats, img_translation, img_scale, lidar2img):
    frustum = jnp.asarray(FRUSTUM)
    points = frustum[None, None] + img_translation[:, :, None, None, None, :]
    xy = points[..., :2] / img_scale[:, :, None, None, None, None]
    d = points[..., 2:3]
    pts = jnp.concatenate([xy * d, d, jnp.ones_like(d)], axis=-1)
    img2lidar = jnp.linalg.inv(lidar2img.astype(jnp.float32))
    geom = jnp.einsum('bnij,bndhwj->bndhwi', img2lidar, pts)[..., :3]
    Nprime = B * N_CAMS * PPC
    x = cam_feats.reshape(Nprime, C).astype(jnp.float32)
    gf = ((geom - jnp.asarray(SHIFT)) / jnp.asarray(DX)).reshape(Nprime, 3)
    gf = gf.astype(jnp.int32)
    batch_ix = jnp.repeat(jnp.arange(B), Nprime // B)
    kept = ((gf[:, 0] >= 0) & (gf[:, 0] < NX) & (gf[:, 1] >= 0) & (gf[:, 1] < NY)
            & (gf[:, 2] >= 0) & (gf[:, 2] < NZ))
    lin = ((batch_ix * NZ + gf[:, 2]) * NX + gf[:, 0]) * NY + gf[:, 1]
    lin = jnp.where(kept, lin, NCELLS)   # dump bucket
    grid = jnp.zeros((NCELLS + 1, C), jnp.float32).at[lin].add(
        jnp.where(kept[:, None], x, 0.0))
    out = grid[:NCELLS].reshape(B, NZ, NX, NY, C).transpose(0, 1, 4, 2, 3)
    return out.reshape(B, NZ * C, NX, NY)


if __name__ == "__main__":
    key = jax.random.PRNGKey(0)
    k1, k2, k3, k4 = jax.random.split(key, 4)
    cam_feats = jax.random.normal(k1, (B, N_CAMS, D_BINS, FH, FW, C), jnp.float32)
    img_translation = 0.5 * jax.random.normal(k2, (B, N_CAMS, 3), jnp.float32)
    img_scale = 1.0 + 0.1 * jax.random.uniform(k3, (B, N_CAMS), jnp.float32)
    lidar2img = (2.0 * jnp.eye(4, dtype=jnp.float32)[None, None]
                 + 0.2 * jax.random.normal(k4, (B, N_CAMS, 4, 4), jnp.float32))

    out = base_transform_forward(cam_feats, img_translation, img_scale, lidar2img)
    out = jax.block_until_ready(out)

    ref = reference_forward(cam_feats, img_translation, img_scale, lidar2img)
    assert out.shape == (B, NZ * C, NX, NY), out.shape
    assert np.allclose(np.asarray(out), np.asarray(ref), rtol=1e-3, atol=1e-3), \
        "Pallas result does not match JAX reference"
    print("KERNEL_OK")
</pallas_src>

<mosaic_0001>
module attributes {stable_mosaic.version = 11 : i64} {
  func.func @_geometry_kernel(%arg0: i32, %arg1: memref<3x256xf32, #tpu.memory_space<vmem>>, %arg2: memref<8x20xf32, #tpu.memory_space<vmem>>, %arg3: memref<256x8xi32, #tpu.memory_space<vmem>>) attributes {dimension_semantics = [#tpu.dimension_semantics<arbitrary>], iteration_bounds = array<i64: 1>, scalar_prefetch = 0 : i64, scratch_operands = 0 : i64, tpu.core_type = #tpu.core_type<tc>, window_params = [{pipeline_mode = #tpu.pipeline_mode<synchronous>, transform_indices = @transform_0, window_bounds = array<i64: 3, 256>}, {pipeline_mode = #tpu.pipeline_mode<synchronous>, transform_indices = @transform_1, window_bounds = array<i64: 8, 20>}, {pipeline_mode = #tpu.pipeline_mode<synchronous>, transform_indices = @transform_2, window_bounds = array<i64: 256, 8>}]} {
    %c0 = arith.constant 0 : index
    %c0_0 = arith.constant 0 : index
    %0 = vector.load %arg2[%c0, %c0_0] : memref<8x20xf32, #tpu.memory_space<vmem>>, vector<8x20xf32>
    %c0_1 = arith.constant 0 : index
    %c0_2 = arith.constant 0 : index
    %1 = vector.load %arg1[%c0_1, %c0_2] : memref<3x256xf32, #tpu.memory_space<vmem>>, vector<1x256xf32>
    %c1 = arith.constant 1 : index
    %c0_3 = arith.constant 0 : index
    %2 = vector.load %arg1[%c1, %c0_3] : memref<3x256xf32, #tpu.memory_space<vmem>>, vector<1x256xf32>
    %c2 = arith.constant 2 : index
    %c0_4 = arith.constant 0 : index
    %3 = vector.load %arg1[%c2, %c0_4] : memref<3x256xf32, #tpu.memory_space<vmem>>, vector<1x256xf32>
    %4 = vector.extract_strided_slice %0 {offsets = [0, 19], sizes = [8, 1], strides = [1, 1]} : vector<8x20xf32> to vector<8x1xf32>
    %5 = vector.extract_strided_slice %0 {offsets = [0, 16], sizes = [8, 1], strides = [1, 1]} : vector<8x20xf32> to vector<8x1xf32>
    %6 = vector.broadcast %1 : vector<1x256xf32> to vector<8x256xf32>
    %7 = vector.broadcast %5 : vector<8x1xf32> to vector<8x256xf32>
    %8 = arith.addf %6, %7 : vector<8x256xf32>
    %9 = vector.broadcast %4 : vector<8x1xf32> to vector<8x256xf32>
    %10 = arith.divf %8, %9 : vector<8x256xf32>
    %11 = vector.extract_strided_slice %0 {offsets = [0, 17], sizes = [8, 1], strides = [1, 1]} : vector<8x20xf32> to vector<8x1xf32>
    %12 = vector.broadcast %2 : vector<1x256xf32> to vector<8x256xf32>
    %13 = vector.broadcast %11 : vector<8x1xf32> to vector<8x256xf32>
    %14 = arith.addf %12, %13 : vector<8x256xf32>
    %15 = vector.broadcast %4 : vector<8x1xf32> to vector<8x256xf32>
    %16 = arith.divf %14, %15 : vector<8x256xf32>
    %17 = vector.extract_strided_slice %0 {offsets = [0, 18], sizes = [8, 1], strides = [1, 1]} : vector<8x20xf32> to vector<8x1xf32>
    %18 = vector.broadcast %3 : vector<1x256xf32> to vector<8x256xf32>
    %19 = vector.broadcast %17 : vector<8x1xf32> to vector<8x256xf32>
    %20 = arith.addf %18, %19 : vector<8x256xf32>
    %21 = arith.mulf %10, %20 : vector<8x256xf32>
    %22 = arith.mulf %16, %20 : vector<8x256xf32>
    %23 = vector.extract_strided_slice %0 {offsets = [0, 0], sizes = [8, 1], strides = [1, 1]} : vector<8x20xf32> to vector<8x1xf32>
    %24 = vector.extract_strided_slice %0 {offsets = [0, 1], sizes = [8, 1], strides = [1, 1]} : vector<8x20xf32> to vector<8x1xf32>
    %25 = vector.extract_strided_slice %0 {offsets = [0, 2], sizes = [8, 1], strides = [1, 1]} : vector<8x20xf32> to vector<8x1xf32>
    %26 = vector.extract_strided_slice %0 {offsets = [0, 3], sizes = [8, 1], strides = [1, 1]} : vector<8x20xf32> to vector<8x1xf32>
    %27 = vector.extract_strided_slice %0 {offsets = [0, 4], sizes = [8, 1], strides = [1, 1]} : vector<8x20xf32> to vector<8x1xf32>
    %28 = vector.extract_strided_slice %0 {offsets = [0, 5], sizes = [8, 1], strides = [1, 1]} : vector<8x20xf32> to vector<8x1xf32>
    %29 = vector.extract_strided_slice %0 {offsets = [0, 6], sizes = [8, 1], strides = [1, 1]} : vector<8x20xf32> to vector<8x1xf32>
    %30 = vector.extract_strided_slice %0 {offsets = [0, 7], sizes = [8, 1], strides = [1, 1]} : vector<8x20xf32> to vector<8x1xf32>
    %31 = vector.extract_strided_slice %0 {offsets = [0, 8], sizes = [8, 1], strides = [1, 1]} : vector<8x20xf32> to vector<8x1xf32>
    %32 = vector.extract_strided_slice %0 {offsets = [0, 9], sizes = [8, 1], strides = [1, 1]} : vector<8x20xf32> to vector<8x1xf32>
    %33 = vector.extract_strided_slice %0 {offsets = [0, 10], sizes = [8, 1], strides = [1, 1]} : vector<8x20xf32> to vector<8x1xf32>
    %34 = vector.extract_strided_slice %0 {offsets = [0, 11], sizes = [8, 1], strides = [1, 1]} : vector<8x20xf32> to vector<8x1xf32>
    %35 = vector.broadcast %23 : vector<8x1xf32> to vector<8x256xf32>
    %36 = arith.mulf %35, %21 : vector<8x256xf32>
    %37 = vector.broadcast %24 : vector<8x1xf32> to vector<8x256xf32>
    %38 = arith.mulf %37, %22 : vector<8x256xf32>
    %39 = arith.addf %36, %38 : vector<8x256xf32>
    %40 = vector.broadcast %25 : vector<8x1xf32> to vector<8x256xf32>
    %41 = arith.mulf %40, %20 : vector<8x256xf32>
    %42 = arith.addf %39, %41 : vector<8x256xf32>
    %43 = vector.broadcast %26 : vector<8x1xf32> to vector<8x256xf32>
    %44 = arith.addf %42, %43 : vector<8x256xf32>
    %45 = vector.broadcast %27 : vector<8x1xf32> to vector<8x256xf32>
    %46 = arith.mulf %45, %21 : vector<8x256xf32>
    %47 = vector.broadcast %28 : vector<8x1xf32> to vector<8x256xf32>
    %48 = arith.mulf %47, %22 : vector<8x256xf32>
    %49 = arith.addf %46, %48 : vector<8x256xf32>
    %50 = vector.broadcast %29 : vector<8x1xf32> to vector<8x256xf32>
    %51 = arith.mulf %50, %20 : vector<8x256xf32>
    %52 = arith.addf %49, %51 : vector<8x256xf32>
    %53 = vector.broadcast %30 : vector<8x1xf32> to vector<8x256xf32>
    %54 = arith.addf %52, %53 : vector<8x256xf32>
    %55 = vector.broadcast %31 : vector<8x1xf32> to vector<8x256xf32>
    %56 = arith.mulf %55, %21 : vector<8x256xf32>
    %57 = vector.broadcast %32 : vector<8x1xf32> to vector<8x256xf32>
    %58 = arith.mulf %57, %22 : vector<8x256xf32>
    %59 = arith.addf %56, %58 : vector<8x256xf32>
    %60 = vector.broadcast %33 : vector<8x1xf32> to vector<8x256xf32>
    %61 = arith.mulf %60, %20 : vector<8x256xf32>
    %62 = arith.addf %59, %61 : vector<8x256xf32>
    %63 = vector.broadcast %34 : vector<8x1xf32> to vector<8x256xf32>
    %64 = arith.addf %62, %63 : vector<8x256xf32>
    %cst = arith.constant -4.000000e+01 : f32
    %65 = vector.broadcast %cst : f32 to vector<8x256xf32>
    %66 = arith.subf %44, %65 : vector<8x256xf32>
    %cst_5 = arith.constant 1.000000e+01 : f32
    %67 = vector.broadcast %cst_5 : f32 to vector<8x256xf32>
    %68 = arith.divf %66, %67 : vector<8x256xf32>
    %69 = arith.fptosi %68 : vector<8x256xf32> to vector<8x256xi32>
    %cst_6 = arith.constant -4.000000e+01 : f32
    %70 = vector.broadcast %cst_6 : f32 to vector<8x256xf32>
    %71 = arith.subf %54, %70 : vector<8x256xf32>
    %cst_7 = arith.constant 1.000000e+01 : f32
    %72 = vector.broadcast %cst_7 : f32 to vector<8x256xf32>
    %73 = arith.divf %71, %72 : vector<8x256xf32>
    %74 = arith.fptosi %73 : vector<8x256xf32> to vector<8x256xi32>
    %cst_8 = arith.constant -2.000000e+01 : f32
    %75 = vector.broadcast %cst_8 : f32 to vector<8x256xf32>
    %76 = arith.subf %64, %75 : vector<8x256xf32>
    %cst_9 = arith.constant 2.000000e+01 : f32
    %77 = vector.broadcast %cst_9 : f32 to vector<8x256xf32>
    %78 = arith.divf %76, %77 : vector<8x256xf32>
    %79 = arith.fptosi %78 : vector<8x256xf32> to vector<8x256xi32>
    %c0_i32 = arith.constant 0 : i32
    %80 = vector.broadcast %c0_i32 : i32 to vector<8x256xi32>
    %81 = arith.cmpi sge, %69, %80 : vector<8x256xi32>
    %c8_i32 = arith.constant 8 : i32
    %82 = vector.broadcast %c8_i32 : i32 to vector<8x256xi32>
    %83 = arith.cmpi slt, %69, %82 : vector<8x256xi32>
    %84 = arith.andi %81, %83 : vector<8x256xi1>
    %c0_i32_10 = arith.constant 0 : i32
    %85 = vector.broadcast %c0_i32_10 : i32 to vector<8x256xi32>
    %86 = arith.cmpi sge, %74, %85 : vector<8x256xi32>
    %87 = arith.andi %84, %86 : vector<8x256xi1>
    %c8_i32_11 = arith.constant 8 : i32
    %88 = vector.broadcast %c8_i32_11 : i32 to vector<8x256xi32>
    %89 = arith.cmpi slt, %74, %88 : vector<8x256xi32>
    %90 = arith.andi %87, %89 : vector<8x256xi1>
    %c0_i32_12 = arith.constant 0 : i32
    %91 = vector.broadcast %c0_i32_12 : i32 to vector<8x256xi32>
    %92 = arith.cmpi sge, %79, %91 : vector<8x256xi32>
    %93 = arith.andi %90, %92 : vector<8x256xi1>
    %c2_i32 = arith.constant 2 : i32
    %94 = vector.broadcast %c2_i32 : i32 to vector<8x256xi32>
    %95 = arith.cmpi slt, %79, %94 : vector<8x256xi32>
    %96 = arith.andi %93, %95 : vector<8x256xi1>
    %97 = tpu.iota {dimensions = array<i32: 0>} : vector<8x256xi32>
    %c4_i32 = arith.constant 4 : i32
    %98 = vector.broadcast %c4_i32 : i32 to vector<8x256xi32>
    %99 = arith.cmpi slt, %97, %98 : vector<8x256xi32>
    %100 = arith.andi %96, %99 : vector<8x256xi1>
    %c8_i32_13 = arith.constant 8 : i32
    %101 = vector.broadcast %c8_i32_13 : i32 to vector<8x256xi32>
    %102 = arith.muli %79, %101 : vector<8x256xi32>
    %103 = arith.addi %102, %69 : vector<8x256xi32>
    %c8_i32_14 = arith.constant 8 : i32
    %104 = vector.broadcast %c8_i32_14 : i32 to vector<8x256xi32>
    %105 = arith.muli %103, %104 : vector<8x256xi32>
    %106 = arith.addi %105, %74 : vector<8x256xi32>
    %c1073741824_i32 = arith.constant 1073741824 : i32
    %107 = vector.broadcast %c1073741824_i32 : i32 to vector<8x256xi32>
    %108 = arith.select %100, %106, %107 : vector<8x256xi1>, vector<8x256xi32>
    %109 = tpu.transpose %108, [1, 0] : vector<8x256xi32> -> vector<256x8xi32>
    %c0_15 = arith.constant 0 : index
    %c0_16 = arith.constant 0 : index
    %110 = vector.load %arg3[%c0_15, %c0_16] : memref<256x8xi32, #tpu.memory_space<vmem>>, vector<256x8xi32>
    tpu.vector_store %arg3[%c0_15, %c0_16], %109 {strides = array<i32>} : memref<256x8xi32, #tpu.memory_space<vmem>>, vector<256x8xi32>,
    return
  }
  func.func @transform_0(%arg0: i32) -> (i32, i32) {
    %c0_i32 = arith.constant 0 : i32
    %c0_i32_0 = arith.constant 0 : i32
    %c0_i32_1 = arith.constant 0 : i32
    return %c0_i32, %c0_i32_0 : i32, i32
  }
  func.func @transform_1(%arg0: i32) -> (i32, i32) {
    %c0_i32 = arith.constant 0 : i32
    %c0_i32_0 = arith.constant 0 : i32
    %c0_i32_1 = arith.constant 0 : i32
    return %c0_i32, %c0_i32_0 : i32, i32
  }
  func.func @transform_2(%arg0: i32) -> (i32, i32) {
    %c0_i32 = arith.constant 0 : i32
    %c0_i32_0 = arith.constant 0 : i32
    %c0_i32_1 = arith.constant 0 : i32
    return %c0_i32, %c0_i32_0 : i32, i32
  }
}

module attributes {stable_mosaic.version = 11 : i64} {
  func.func @_bev_pool_kernel(%arg0: i32, %arg1: memref<256x8xi32, #tpu.memory_space<vmem>>, %arg2: memref<8x1024xf32, #tpu.memory_space<vmem>>, %arg3: memref<8x256xf32, #tpu.memory_space<vmem>>) attributes {dimension_semantics = [#tpu.dimension_semantics<parallel>], iteration_bounds = array<i64: 1>, scalar_prefetch = 0 : i64, scratch_operands = 0 : i64, tpu.core_type = #tpu.core_type<tc>, window_params = [{pipeline_mode = #tpu.pipeline_mode<synchronous>, transform_indices = @transform_0, window_bounds = array<i64: 256, 8>}, {pipeline_mode = #tpu.pipeline_mode<synchronous>, transform_indices = @transform_1, window_bounds = array<i64: 8, 1024>}, {transform_indices = @transform_2, window_bounds = array<i64: 8, 256>}]} {
    %c256_i32 = arith.constant 256 : i32
    %0 = arith.muli %arg0, %c256_i32 : i32
    %1 = tpu.iota {dimensions = array<i32: 1>} : vector<1x256xi32>
    %2 = vector.broadcast %0 : i32 to vector<1x256xi32>
    %3 = arith.addi %2, %1 : vector<1x256xi32>
    %cst = arith.constant 0.000000e+00 : f32
    %4 = vector.broadcast %cst : f32 to vector<8x256xf32>
    %c0 = arith.constant 0 : index
    %c0_0 = arith.constant 0 : index
    %5 = vector.load %arg1[%c0, %c0_0] : memref<256x8xi32, #tpu.memory_space<vmem>>, vector<256x1xi32>
    %c0_i32 = arith.constant 0 : i32
    %6 = vector.broadcast %c0_i32 : i32 to vector<1x256xi32>
    %7 = arith.subi %3, %6 : vector<1x256xi32>
    %8 = vector.broadcast %5 : vector<256x1xi32> to vector<256x256xi32>
    %9 = vector.broadcast %7 : vector<1x256xi32> to vector<256x256xi32>
    %10 = arith.cmpi eq, %8, %9 : vector<256x256xi32>
    %11 = arith.extui %10 : vector<256x256xi1> to vector<256x256xi32>
    %12 = arith.sitofp %11 : vector<256x256xi32> to vector<256x256xf32>
    %c0_1 = arith.constant 0 : index
    %c0_2 = arith.constant 0 : index
    %13 = vector.load %arg2[%c0_1, %c0_2] : memref<8x1024xf32, #tpu.memory_space<vmem>>, vector<8x256xf32>
    %cst_3 = arith.constant dense<0.000000e+00> : vector<8x256xf32>
    %14 = tpu.matmul %13, %12, %cst_3 {dimension_numbers = #tpu.dot_dimension_numbers<[1], [0], [0], [1], [0, 0, 1, 1], [], []>} : vector<8x256xf32>, vector<256x256xf32>, vector<8x256xf32> -> vector<8x256xf32>
    %15 = arith.addf %4, %14 : vector<8x256xf32>
    %c0_4 = arith.constant 0 : index
    %c1 = arith.constant 1 : index
    %16 = vector.load %arg1[%c0_4, %c1] : memref<256x8xi32, #tpu.memory_space<vmem>>, vector<256x1xi32>
    %c0_i32_5 = arith.constant 0 : i32
    %17 = vector.broadcast %c0_i32_5 : i32 to vector<1x256xi32>
    %18 = arith.subi %3, %17 : vector<1x256xi32>
    %19 = vector.broadcast %16 : vector<256x1xi32> to vector<256x256xi32>
    %20 = vector.broadcast %18 : vector<1x256xi32> to vector<256x256xi32>
    %21 = arith.cmpi eq, %19, %20 : vector<256x256xi32>
    %22 = arith.extui %21 : vector<256x256xi1> to vector<256x256xi32>
    %23 = arith.sitofp %22 : vector<256x256xi32> to vector<256x256xf32>
    %c0_6 = arith.constant 0 : index
    %c256 = arith.constant 256 : index
    %24 = vector.load %arg2[%c0_6, %c256] : memref<8x1024xf32, #tpu.memory_space<vmem>>, vector<8x256xf32>
    %cst_7 = arith.constant dense<0.000000e+00> : vector<8x256xf32>
    %25 = tpu.matmul %24, %23, %cst_7 {dimension_numbers = #tpu.dot_dimension_numbers<[1], [0], [0], [1], [0, 0, 1, 1], [], []>} : vector<8x256xf32>, vector<256x256xf32>, vector<8x256xf32> -> vector<8x256xf32>
    %26 = arith.addf %15, %25 : vector<8x256xf32>
    %c0_8 = arith.constant 0 : index
    %c2 = arith.constant 2 : index
    %27 = vector.load %arg1[%c0_8, %c2] : memref<256x8xi32, #tpu.memory_space<vmem>>, vector<256x1xi32>
    %c128_i32 = arith.constant 128 : i32
    %28 = vector.broadcast %c128_i32 : i32 to vector<1x256xi32>
    %29 = arith.subi %3, %28 : vector<1x256xi32>
    %30 = vector.broadcast %27 : vector<256x1xi32> to vector<256x256xi32>
    %31 = vector.broadcast %29 : vector<1x256xi32> to vector<256x256xi32>
    %32 = arith.cmpi eq, %30, %31 : vector<256x256xi32>
    %33 = arith.extui %32 : vector<256x256xi1> to vector<256x256xi32>
    %34 = arith.sitofp %33 : vector<256x256xi32> to vector<256x256xf32>
    %c0_9 = arith.constant 0 : index
    %c512 = arith.constant 512 : index
    %35 = vector.load %arg2[%c0_9, %c512] : memref<8x1024xf32, #tpu.memory_space<vmem>>, vector<8x256xf32>
    %cst_10 = arith.constant dense<0.000000e+00> : vector<8x256xf32>
    %36 = tpu.matmul %35, %34, %cst_10 {dimension_numbers = #tpu.dot_dimension_numbers<[1], [0], [0], [1], [0, 0, 1, 1], [], []>} : vector<8x256xf32>, vector<256x256xf32>, vector<8x256xf32> -> vector<8x256xf32>
    %37 = arith.addf %26, %36 : vector<8x256xf32>
    %c0_11 = arith.constant 0 : index
    %c3 = arith.constant 3 : index
    %38 = vector.load %arg1[%c0_11, %c3] : memref<256x8xi32, #tpu.memory_space<vmem>>, vector<256x1xi32>
    %c128_i32_12 = arith.constant 128 : i32
    %39 = vector.broadcast %c128_i32_12 : i32 to vector<1x256xi32>
    %40 = arith.subi %3, %39 : vector<1x256xi32>
    %41 = vector.broadcast %38 : vector<256x1xi32> to vector<256x256xi32>
    %42 = vector.broadcast %40 : vector<1x256xi32> to vector<256x256xi32>
    %43 = arith.cmpi eq, %41, %42 : vector<256x256xi32>
    %44 = arith.extui %43 : vector<256x256xi1> to vector<256x256xi32>
    %45 = arith.sitofp %44 : vector<256x256xi32> to vector<256x256xf32>
    %c0_13 = arith.constant 0 : index
    %c768 = arith.constant 768 : index
    %46 = vector.load %arg2[%c0_13, %c768] : memref<8x1024xf32, #tpu.memory_space<vmem>>, vector<8x256xf32>
    %cst_14 = arith.constant dense<0.000000e+00> : vector<8x256xf32>
    %47 = tpu.matmul %46, %45, %cst_14 {dimension_numbers = #tpu.dot_dimension_numbers<[1], [0], [0], [1], [0, 0, 1, 1], [], []>} : vector<8x256xf32>, vector<256x256xf32>, vector<8x256xf32> -> vector<8x256xf32>
    %48 = arith.addf %37, %47 : vector<8x256xf32>
    %c0_15 = arith.constant 0 : index
    %c0_16 = arith.constant 0 : index
    %49 = vector.load %arg3[%c0_15, %c0_16] : memref<8x256xf32, #tpu.memory_space<vmem>>, vector<8x256xf32>
    tpu.vector_store %arg3[%c0_15, %c0_16], %48 {strides = array<i32>} : memref<8x256xf32, #tpu.memory_space<vmem>>, vector<8x256xf32>,
    return
  }
  func.func @transform_0(%arg0: i32) -> (i32, i32) {
    %c0_i32 = arith.constant 0 : i32
    %c0_i32_0 = arith.constant 0 : i32
    %c0_i32_1 = arith.constant 0 : i32
    return %c0_i32, %c0_i32_0 : i32, i32
  }
  func.func @transform_1(%arg0: i32) -> (i32, i32) {
    %c0_i32 = arith.constant 0 : i32
    %c0_i32_0 = arith.constant 0 : i32
    %c0_i32_1 = arith.constant 0 : i32
    return %c0_i32, %c0_i32_0 : i32, i32
  }
  func.func @transform_2(%arg0: i32) -> (i32, i32) {
    %c0_i32 = arith.constant 0 : i32
    %c0_i32_0 = arith.constant 0 : i32
    return %c0_i32, %arg0 : i32, i32
  }
}

</mosaic_0001>

<bundles_post_ra>
// kernel: custom-call.11
= control target key start
LH: loop header
LB: loop body
LE: loop exit
PB: predicated region body
PF: predicated region fallthrough
CT: control target
= control target key end

     0   :  { %s1082_s0 = inlined_call_operand.hbm [shape: f32[2,2,4,4], index: 0, kind: input, shape index: {}]   ;;  %s1083_s1 = inlined_call_operand.vmem [shape: f32[2,2,4,4], index: 1, kind: output, shape index: {0}]   ;;  %s1084_s2 = inlined_call_operand.hbm [shape: s32[2,2,4], index: 2, kind: output, shape index: {1}]   ;;  %s1085_s3 = inlined_call_operand.vmem [shape: s32[2,2,4], index: 3, kind: output, shape index: {2}]  }
   0x1   :  { %1088 = sst [smem:[#allocation14_spill]] %s1082_s0 }
   0x2   :  { %5 = vsyncpa [#allocation2], 0 }
   0x3   :  { %7 = vsyncpa [#allocation2 + $0x1], 0 }
   0x4   :  { %8 = vsyncpa [#allocation3], 0 }
   0x5   :  { %10 = vsyncpa [#allocation3 + $0x1], 0  ;;  %s841_s12 = smov 0   ;;  %s843_s13 = smov 0  }
   0x6   :  { %s845_s14 = smov 0   ;;  %s847_s15 = smov 0  }
   0x7   :  { %s849_s16 = smov 0   ;;  %s851_s17 = smov 0  }
   0x8   :  { %s853_s18 = smov 0   ;;  %s855_s19 = smov 0  }
   0x9 LB: > { %s575_s20 = sadd.s32 4294967295, %s812_s19   ;;  %s576_s21 = sadd.s32 4294967294, %s812_s19   ;;  %s812_s19 = sphi %s855_s19, %s16_s19   ;;  %s808_s18 = sphi %s853_s18, %s1105_s18   ;;  %s804_s17 = sphi %s851_s17, %s1104_s17   ;;  %s800_s16 = sphi %s849_s16, %s1103_s16   ;;  %s796_s15 = sphi %s847_s15, %s1102_s15   ;;  %s792_s14 = sphi %s845_s14, %s1101_s14   ;;  %s788_s13 = sphi %s843_s13, %s1100_s13   ;;  %s784_s12 = sphi %s841_s12, %s1099_s12  }
   0xa   : > { %s25_s22 = sadd.s32 1, %s804_s17  ;;  %s28_s23 = sadd.s32 1, %s808_s18 }
   0xb   : > { %p26_p0 = scmp.ge.s32.totalorder %s25_s22, 2  ;;  %s32_s24 = sshrl.u32 %s804_s17, 3 }
   0xc   : > { %s39_s25 = sadd.s32 1, %s792_s14  ;;  %p49_p1 = scmp.ne.s32.totalorder %s792_s14, %s788_s13 }
   0xd   : > { %s1107_s22 = smov (%p26_p0, %s25_s22), 0  ;;  %s1109_s23 = smov (!%p26_p0, %s28_s23), %s808_s18 }
   0xe   : > { %s33_s26 = sshrl.u32 %s1107_s22, 3  ;;  %p50_p2 = scmp.eq.s32.totalorder %s575_s20, 3 }
   0xf   : > { %p30_p3 = scmp.ge.s32.totalorder %s1109_s23, 2  ;;  %s35_s27 = ssub.s32 %s32_s24, %s33_s26 }
  0x10   : > { %p895_p4 = por %p50_p2, %p49_p1  ;;  %p55_p5 = scmp.ne.s32.totalorder %s788_s13, %s784_s12 }
  0x11   : > { %s1111_s23 = smov (%p30_p3, %s1109_s23), 0  ;;  %p56_p6 = scmp.eq.s32.totalorder %s576_s21, 3 }
  0x12   : > { %1090 = sst [smem:[#allocation13_spill]] %s1111_s23  ;;  %s34_s29 = ssub.s32 %s808_s18, %s1111_s23 }
  0x13   : > { %p607_p7 = scmp.lt.s32.totalorder %s812_s19, 4  ;;  %s36_s30 = sor.u32 %s35_s27, %s34_s29 }
  0x14   : > { %p906_p8 = por %p56_p6, %p55_p5  ;;  %p37_p9 = scmp.eq.s32.totalorder %s36_s30, 0 }
  0x15   : > { %s103_s5 = sand.u32 1, %s812_s19   ;;  %s580_s8 = sshll.u32 %s808_s18, 1 }
  0x16   : > { %s1091_s4 = scalar_select %p906_p8, 1, 0 }
  0x17   : > { %s579_s6 = sshll.u32 %s103_s5, 2  ;;  %s112_s9 = sadd.s32 %s804_s17, %s580_s8 }
  0x18   : > { %s912_s7 = scalar_select %p37_p9, %s792_s14, %s39_s25  }
  0x19   : > { %s107_s10 = scalar_lea.vmem [#allocation1], %s579_s6  ;;  %s581_s24 = sshll.u32 %s112_s9, 6 }
  0x1a   : > { %s116_s11 = sshll.u32 %s107_s10, 4  ;;  %s1092_s0 = sld [smem:[#allocation14_spill]]  ;;  %s916_s11 = int_to_ptr.vmem [resolvable:$true] %s116_s11 }
  0x1b   : > { %s104_s29 = scalar_lea.sflag [#allocation2], %s103_s5 }
  0x20   : > { %s921_s27 = scalar_lea.hbm %s1092_s0, %s581_s24  ;;  %s688_s8 = scalar_lea.hbm %s1092_s0, 256 }
  0x21   : > { %s684_s25 = scalar_lea.hbm %s921_s27, 64  ;;  %p689_p0 = scmp.lt.u32.totalorder %s921_s27, %s1092_s0 }
  0x22   : > { %p685_p11 = scmp.ne.s32.totalorder %s921_s27, %s684_s25  ;;  %p690_p1 = scmp.lt.u32.totalorder %s688_s8, %s684_s25 }
  0x23   : > { %p692_p3 = scmp.lt.u32.totalorder %s684_s25, %s921_s27 }
  0x24   : > { %p686_p12 = pnand %p685_p11, %p607_p7  ;;  %p691_p2 = por %p690_p1, %p689_p0 }
  0x26   : > { %p687_p13 = pneg %p686_p12  ;;  %p693_p5 = por %p692_p3, %p691_p2 }
  0x28   : > { %p694_p6 = pnand %p693_p5, %p687_p13 }
  0x2a   : > { %697 = shalt.err (!%p694_p6)
}
  0x2b   : > { %s698_s5 = scalar_lea.vmem %s916_s11, 64  ;;  %s818_s24 = smov [#allocation1]  }
  0x2c   : > { %p699_p9 = scmp.ne.s32.totalorder %s916_s11, %s698_s5  ;;  %s702_s21 = sshll.u32 %s818_s24, 4  ;;  %s703_s21 = int_to_ptr.vmem [resolvable:$false] %s702_s21 }
  0x2d   : > { %s704_s26 = scalar_lea.vmem %s703_s21, 128  ;;  %p705_p10 = scmp.lt.s32.totalorder %s916_s11, %s703_s21 }
  0x2e   : > { %p700_p11 = pnand %p699_p9, %p607_p7  ;;  %p706_p8 = scmp.lt.s32.totalorder %s704_s26, %s698_s5 }
  0x30   : > { %p701_p12 = pneg %p700_p11  ;;  %p707_p0 = por %p706_p8, %p705_p10 }
  0x32   : > { %p708_p1 = pnand %p707_p0, %p701_p12 }
  0x34   : > { %711 = shalt.err (!%p708_p1)
}
  0x35   : > { %600 = dma.hbm_to_vmem [thread:$0]  (%p607_p7), %s921_s27, 64, %s916_s11, %s104_s29  }
  0x36   : > { %p121_p13 = scmp.lt.s32.totalorder %s812_s19, 5  ;;  %p1093_p2 = scmp.ge.s32.totalorder %s812_s19, 1 }
  0x38   : > { %p122_p3 = pnand %p1093_p2, %p121_p13 }
  0x3a   : > { %125 = sbr.rel (%p122_p3) target bundleno = 493 (0x1ed), region = 20 }
  0x41   : > { %s127_s25 = sand.u32 1, %s575_s20  }
  0x42   : > { %s128_s30 = scalar_lea.sflag [#allocation2], %s127_s25 }
  0x43   : > { %776 = dma.done.wait %s128_s30, 64  }
  0x44   : > { %777 = vsyncadd %s128_s30, 4294967232  ;;  %s583_s6 = sshll.u32 %s127_s25, 2  ;;  %s163_s8 = sand.u32 7, %s796_s15   ;;  %v168_v0 = vlaneseq  ;;  %v819_v2 = vmov 0  }
  0x45   : > { %s954_s11 = scalar_lea.vmem [#allocation6], %s163_s8  ;;  %s1086_s27 = sand.u32 1, %s788_s13  }
  0x46   : > { %v952_v1 = vshrl.u32 %v168_v0, 7  ;;  %167 = vst [vmem:[%s954_s11] sm:$0x1] %v819_v2  ;;  %s961_s20 = sshll.u32 %s1086_s27, 1  ;;  %s137_s29 = scalar_lea.vmem [#allocation1], %s583_s6 }
  0x47   : > { %v157_v3 = vld [vmem:[%s137_s29] sm:$0xf]  ;;  %s963_s9 = scalar_lea.vmem [#allocation5], %s583_s6  ;;  %s148_s10 = scalar_lea.vmem [#allocation7], %s961_s20 }
  0x48   : > { %172 = vst [vmem:[#allocation10] sm:$0xff] %v952_v1  ;;  %158 = vst [vmem:[#allocation0] sm:$0xf] %v157_v3  ;;  %s967_s24 = scalar_lea.vmem [#allocation8], %s163_s8  ;;  %s969_s21 = smov 0  }
  0x4f   : > { %v161_v4 = vld [vmem:[#allocation0] sm:$0xff] }
  0x50   : > { %162 = vst [vmem:[#allocation4] sm:$0xff] %v161_v4 }
  0x51 LB: >> { %vm188_vm0 = vcmp.lt.s32.totalorder %v952_v1, 4  ;;  %v976_v7 = vstv %s816_s21  ;;  %s229_s26 = ssub.s32 128, %s816_s21  ;;  %v235_v37 = vand.u32 127, %v168_v0  ;;  %v238_v39 = vld [vmem:[%s954_s11] ss:$0 sm:$0xff]  ;;  %s241_s25 = scalar_lea.vmem [#allocation4], %s816_s21  ;;  %s816_s21 = sphi %s969_s21, %s178_s21  }
  0x52   : >> { %vm187_vm1 = vcmp.ge.s32.totalorder %v952_v1, %v976_v7  ;;  %s247_s6 = scalar_lea.vmem [#allocation10], %s816_s21  ;;  %vm267_vm15 = vcmp.gt.s32.totalorder %v952_v1, %v976_v7  ;;  %s178_s21 = sadd.s32 1, %s816_s21  }
  0x53   : >> { %vm189_vm3 = vmand %vm187_vm1, %vm188_vm0  ;;  %vm259_vm12 = vcmp.gt.s32.totalorder %v235_v37, %v976_v7  ;;  %vm236_vm13 = vcmp.eq.s32.totalorder %v235_v37, %v976_v7  ;;  %v249_v41 = vld [vmem:[%s247_s6] ss:$0 sm:$0xff]  ;;  %p175_p7 = scmp.ge.s32.totalorder %s178_s21, 4  }
  0x54   : >> { %vm271_vm1 = vmand %vm267_vm15, %vm236_vm13 }
  0x57   : >> { %v183_v5 = vld [vmem:[#allocation4] sm:$0xff]  ;;  %v243_v40 = vld [vmem:[%s241_s25] ss:$0 sm:$0xff] }
  0x58   : >> { %v184_v6 = vand.u32 2147483647, %v183_v5 }
  0x5a   : >> { %vm587_vm2 = vcmp.gt.f32.partialorder %v184_v6, -inf }
  0x5b   : >> { %vm191_vm4 = vmand %vm189_vm3, %vm587_vm2 }
  0x5c   : >> { %v192_v8 = vsel %vm191_vm4, %v952_v1, %v976_v7  ;;  %v193_v9 = vsel %vm191_vm4, %v184_v6, -inf }
  0x5d   : >> { %v194_v10 = vrot.slane %v193_v9, 1  ;;  %v195_v11 = vrot.slane %v192_v8, 1 }
  0x5f   : >> { %vm196_vm5 = vcmp.ge.f32.partialorder %v194_v10, %v193_v9  ;;  %v199_v12 = vrot.slane %v194_v10, 1  ;;  %v200_v13 = vrot.slane %v195_v11, 1 }
  0x60   : >> { %v197_v14 = vsel %vm196_vm5, %v194_v10, %v193_v9  ;;  %v198_v15 = vsel %vm196_vm5, %v195_v11, %v192_v8 }
  0x61   : >> { %vm201_vm6 = vcmp.ge.f32.partialorder %v199_v12, %v197_v14  ;;  %v204_v16 = vrot.slane %v199_v12, 1  ;;  %v205_v17 = vrot.slane %v200_v13, 1 }
  0x62   : >> { %v202_v18 = vsel %vm201_vm6, %v199_v12, %v197_v14  ;;  %v203_v19 = vsel %vm201_vm6, %v200_v13, %v198_v15 }
  0x63   : >> { %vm206_vm7 = vcmp.ge.f32.partialorder %v204_v16, %v202_v18  ;;  %v209_v20 = vrot.slane %v204_v16, 1  ;;  %v210_v21 = vrot.slane %v205_v17, 1 }
  0x64   : >> { %v207_v22 = vsel %vm206_vm7, %v204_v16, %v202_v18  ;;  %v208_v23 = vsel %vm206_vm7, %v205_v17, %v203_v19 }
  0x65   : >> { %vm211_vm8 = vcmp.ge.f32.partialorder %v209_v20, %v207_v22  ;;  %v214_v24 = vrot.slane %v209_v20, 1  ;;  %v215_v25 = vrot.slane %v210_v21, 1 }
  0x66   : >> { %v212_v26 = vsel %vm211_vm8, %v209_v20, %v207_v22  ;;  %v213_v27 = vsel %vm211_vm8, %v210_v21, %v208_v23 }
  0x67   : >> { %vm216_vm9 = vcmp.ge.f32.partialorder %v214_v24, %v212_v26  ;;  %v219_v28 = vrot.slane %v214_v24, 1  ;;  %v220_v29 = vrot.slane %v215_v25, 1 }
  0x68   : >> { %v217_v30 = vsel %vm216_vm9, %v214_v24, %v212_v26  ;;  %v218_v31 = vsel %vm216_vm9, %v215_v25, %v213_v27 }
  0x69   : >> { %vm221_vm10 = vcmp.ge.f32.partialorder %v219_v28, %v217_v30  ;;  %v224_v32 = vrot.slane %v219_v28, 1  ;;  %v225_v33 = vrot.slane %v220_v29, 1 }
  0x6a   : >> { %v222_v34 = vsel %vm221_vm10, %v219_v28, %v217_v30  ;;  %v223_v35 = vsel %vm221_vm10, %v220_v29, %v218_v31 }
  0x6b   : >> { %vm226_vm11 = vcmp.ge.f32.partialorder %v224_v32, %v222_v34 }
  0x6c   : >> { %v228_v36 = vsel %vm226_vm11, %v225_v33, %v223_v35 }
  0x6d   : >> { %230 = vrot.lane.b32.xlu0 %v228_v36, %s229_s26  ;;  %s591_s26 = sshll.u32 (%p175_p7), %s800_s16, 1 }
  0xdf   : >> { %v231_v38 = vpop.permute.xlu0 %230 }
  0xe0   : >> { %597 = vpush %v231_v38 }
 0x111   : >> { %s598_s30 = spop %597 }
 0x112   : >> { %v237_v42 = vstv %s598_s30  ;;  %s242_s8 = scalar_lea.vmem [#allocation4], %s598_s30  ;;  %s248_s29 = scalar_lea.vmem [#allocation10], %s598_s30 }
 0x113   : >> { %v244_v43 = vld [vmem:[%s242_s8] ss:$0 sm:$0xff]  ;;  %v239_v45 = vsel %vm236_vm13, %v237_v42, %v238_v39  ;;  %s359_s30 = sadd.s32 (%p175_p7), %s796_s15, %s591_s26 }
 0x114   : >> { %v250_v44 = vld [vmem:[%s248_s29] ss:$0 sm:$0xff]  ;;  %245 = vst [vmem:[%s242_s8] sm:$0x1] %v243_v40  ;;  %vm253_vm14 = vcmp.ne.f32.partialorder %v244_v43, 0.0  ;;  %240 = vst [vmem:[%s954_s11] sm:$0x1] %v239_v45  ;;  %v260_v52 = vsel %vm259_vm12, %v244_v43, 0.0 }
 0x115   : >> { %251 = vst [vmem:[%s248_s29] sm:$0x1] %v249_v41  ;;  %246 = vst [vmem:[%s241_s25] sm:$0x1] %v244_v43  ;;  %s396_s25 = sshrl.u32 (%p175_p7), %s796_s15, 3  ;;  %s592_s11 = sshll.u32 (%p175_p7), %s359_s30, 2 }
 0x116   : >> { %252 = vst [vmem:[%s247_s6] sm:$0x1] %v250_v44  ;;  %vm254_vm0 = vmand %vm236_vm13, %vm253_vm14  ;;  %s1008_s6 = sadd.s32 (%p175_p7), %s800_s16, %s396_s25  ;;  %s361_s5 = scalar_lea.vmem (%p175_p7), %s1083_s1, %s592_s11 }
 0x117   : >> { %v255_v46 = vsel %vm254_vm0, %v244_v43, 1.0  ;;  %s593_s21 = sshll.u32 (%p175_p7), %s1008_s6, 5  ;;  %s404_s15 = sshll.u32 (%p175_p7), %s148_s10, 4  ;;  %s405_s15 = int_to_ptr.vmem [resolvable:$true] %s404_s15 }
 0x118   : >> { %v268_v47 = vsel %vm267_vm15, %v255_v46, 1.0  ;;  %s1020_s23 = scalar_lea.hbm (%p175_p7), %s1084_s2, %s593_s21  ;;  %s1094_s16 = sand.u32 (%p175_p7), 1, %s788_s13  }
 0x119   : >> { %682 = vrcp.f32 %v268_v47  ;;  %s350_s26 = scalar_lea.sflag (%p175_p7), [#allocation3], %s1094_s16  ;;  %s712_s25 = scalar_lea.vmem (%p175_p7), %s405_s15, 32 }
 0x11a   : > { %p713_p8 = scmp.ne.s32.totalorder (%p175_p7), %s405_s15, %s712_s25  ;;  %s820_s30 = smov (%p175_p7), [#allocation7]  }
 0x11b   : > { %v336_v58 = vld [vmem:[#allocation6] sm:$0x3] (%p175_p7)  ;;  %s716_s8 = sshll.u32 (%p175_p7), %s820_s30, 4  ;;  %s717_s8 = int_to_ptr.vmem [resolvable:$false] %s716_s8 }
 0x11c   : >> { %v264_v49 = vld [vmem:[#allocation4] sm:$0xff]  ;;  %338 = vst [vmem:[%s148_s10] sm:$0x3] (%p175_p7), %v336_v58  ;;  %p714_p10 = pnand (%p175_p7), %p713_p8, %p895_p4  ;;  %p719_p6 = scmp.lt.s32.totalorder (%p175_p7), %s405_s15, %s717_s8 }
 0x11d   : > { %v278_v56 = vld [vmem:[#allocation10] sm:$0xff] (%p175_p7) }
 0x11e   : > { %p715_p5 = pneg (%p175_p7), %p714_p10 }
 0x123   : >> { %v683_v48 = vpop.eup %682 }
 0x124   : >> { %v270_v50 = vmul.f32 %v683_v48, %v264_v49 }
 0x126   : >> { %v272_v51 = vsel %vm271_vm1, %v270_v50, 0.0 }
 0x127   : >> { %273 = vadd.xlane.f32.xlu0 %v272_v51 }
 0x154   : > { %294 = vxpose.xlu0.b32.start.end [1/1] (short) (narrow) (%p175_p7), %v278_v56, 8 }
 0x1b3   : > { %177 = sbr.rel (!%p175_p7) target bundleno = 81 (0x51), region = 173 }
 0x1b4   : >> { %v274_v53 = vpop.xlane.xlu0 %273 }
 0x1b5   : >> { %v275_v54 = vmul.f32 %v274_v53, %v260_v52 }
 0x1b7   : >> { %v276_v55 = vsub.f32 %v270_v50, %v275_v54 }
 0x1b9   : >> { %277 = vst [vmem:[#allocation4] sm:$0xff] %v276_v55 }
 0x1c0   : > { %v330_v57 = vld [vmem:[#allocation4] sm:$0xf] }
 0x1c1   : > { %332 = vst [vmem:[%s963_s9] sm:$0xf] %v330_v57 }
 0x1c8   : > { %v377_v59 = vld [vmem:[%s963_s9] sm:$0xf]  ;;  %s718_s9 = scalar_lea.vmem %s717_s8, 64 }
 0x1c9   : > { %378 = vst [vmem:[%s361_s5] sm:$0xf] %v377_v59  ;;  %p720_p9 = scmp.lt.s32.totalorder %s718_s9, %s712_s25 }
 0x1cb   : > { %p721_p11 = por %p720_p9, %p719_p6 }
 0x1cd   : > { %p722_p12 = pnand %p721_p11, %p715_p5 }
 0x1cf   : > { %725 = shalt.err (!%p722_p12)
}
 0x1d0   : > { %s726_s0 = scalar_lea.hbm %s1020_s23, 32  ;;  %s730_s5 = scalar_lea.hbm %s1084_s2, 64 }
 0x1d1   : > { %p727_p0 = scmp.ne.s32.totalorder %s1020_s23, %s726_s0  ;;  %p731_p2 = scmp.lt.u32.totalorder %s1020_s23, %s1084_s2 }
 0x1d2   : > { %p732_p3 = scmp.lt.u32.totalorder %s730_s5, %s726_s0  ;;  %p734_p8 = scmp.lt.u32.totalorder %s726_s0, %s1020_s23 }
 0x1d3   : > { %p728_p1 = pnand %p727_p0, %p895_p4 }
 0x1d4   : > { %p733_p7 = por %p732_p3, %p731_p2 }
 0x1d5   : > { %p729_p13 = pneg %p728_p1 }
 0x1d6   : > { %p735_p10 = por %p734_p8, %p733_p7 }
 0x1d8   : > { %p736_p5 = pnand %p735_p10, %p729_p13 }
 0x1da   : > { %739 = shalt.err (!%p736_p5)
}
 0x1db   : > { %601 = dma.vmem_to_hbm [thread:$0]  (%p895_p4), %s405_s15, 32, %s1020_s23, %s350_s26   ;;  %v310_v60 = vpop.trf.xlu0 }
 0x1dc   : > { %326 = vst [vmem:[%s967_s24] sm:$0x1] %v310_v60  ;;  %s1095_s29 = scalar_lea.vmem [#allocation9], %s961_s20  ;;  %s594_s16 = sshll.u32 (%p895_p4), %s1008_s6, 1 }
 0x1dd   : > { %s1096_s25 = scalar_lea.vmem (%p895_p4), [#allocation9], %s961_s20  ;;  %s414_s9 = scalar_lea.vmem (%p895_p4), %s1085_s3, %s594_s16 }
 0x1de   : > { %410 = sbr.rel (!%p895_p4) target bundleno = 493 (0x1ed), region = 66 }
 0x1e3   : > { %v342_v61 = vld [vmem:[#allocation8] sm:$0x3] }
 0x1e4   : > { %344 = vst [vmem:[%s1095_s29] sm:$0x3] %v342_v61 }
 0x1eb   : > { %v430_v62 = vld [vmem:[%s1096_s25] sm:$0x3] }
 0x1ec   : > { %431 = vst [vmem:[%s414_s9] sm:$0x3] %v430_v62 }
 0x1ed PF: > { %p608_p6 = scmp.ge.s32.totalorder %s812_s19, 2  ;;  %s458_s23 = sand.u32 1, %s784_s12  }
 0x1ee   : > { %p1097_p9 = scmp.ne.s32.totalorder %s1091_s4, 0  ;;  %s459_s28 = scalar_lea.sflag [#allocation3], %s458_s23 }
 0x1f0   : > { %p604_p11 = pnand %p608_p6, %p1097_p9 }
 0x1f2   : > { %779 = dma.done.wait (!%p604_p11), %s459_s28, 32  }
 0x1f3   : > { %781 = vsyncadd (!%p604_p11), %s459_s28, 4294967264  ;;  %s16_s19 = sadd.s32 1, %s812_s19   ;;  %s1098_s20 = sld [smem:[#allocation13_spill]] }
 0x1f4   : > { %p13_p4 = scmp.ge.s32.totalorder %s16_s19, 6   ;;  %s1099_s12 = smov %s788_s13 }
 0x1f5   : > { %s1100_s13 = smov %s792_s14  ;;  %s1101_s14 = smov %s912_s7 }
 0x1f6   : > { %s1102_s15 = smov %s804_s17  ;;  %s1103_s16 = smov %s808_s18 }
 0x1f7   : > { %s1104_s17 = smov %s1107_s22  ;;  %15 = sbr.rel (!%p13_p4) target bundleno = 9 (0x9), region = 184 }
 0x1f9   : > { %s1105_s18 = smov %s1098_s20 }
 0x1fe   :  { %471 = vsyncpa [#allocation2], 1 }
 0x1ff   :  { %473 = vsyncpa [#allocation2 + $0x1], 1 }
 0x200   :  { %474 = vsyncpa [#allocation3], 1 }
 0x201   :  { %476 = vsyncpa [#allocation3 + $0x1], 1 }

// kernel: custom-call.12
= control target key start
LH: loop header
LB: loop body
LE: loop exit
PB: predicated region body
PF: predicated region fallthrough
CT: control target
= control target key end

     0   :  { %s407_s6 = smov 0   ;;  %s409_s7 = smov 0   ;;  %s476_s0 = inlined_call_operand.vmem [shape: f32[2,2,1,4,4], index: 0, kind: input, shape index: {}]   ;;  %s477_s1 = inlined_call_operand.vmem [shape: f32[2,2,1,4,4], index: 1, kind: output, shape index: {}]  }
   0x1   :  { %s411_s8 = smov 0   ;;  %s413_s9 = smov 0  }
   0x2   :  { %s415_s10 = smov 0  }
   0x3 LB: > { %s299_s11 = sadd.s32 4294967295, %s394_s10   ;;  %s36_s12 = sadd.s32 1, %s386_s8  ;;  %s394_s10 = sphi %s415_s10, %s7_s10   ;;  %s390_s9 = sphi %s413_s9, %s481_s9   ;;  %s386_s8 = sphi %s411_s8, %s480_s8   ;;  %s382_s7 = sphi %s409_s7, %s479_s7   ;;  %s378_s6 = sphi %s407_s6, %s478_s6  }
   0x4   : > { %p38_p0 = scmp.ge.s32.totalorder %s36_s12, 2  ;;  %s40_s13 = sadd.s32 1, %s390_s9 }
   0x5   : > { %p301_p2 = scmp.ge.s32.totalorder %s394_s10, 4 }
   0x6   : > { %s483_s12 = smov (%p38_p0, %s36_s12), 0  ;;  %s485_s13 = smov (!%p38_p0, %s40_s13), %s390_s9 }
   0x7   : > { %p42_p1 = scmp.ge.s32.totalorder %s485_s13, 2  ;;  %54 = sbr.rel (%p301_p2) target bundleno = 15 (0xf), region = 16 }
   0x8   : > { %s56_s14 = sand.u32 (!%p301_p2), 1, %s394_s10   ;;  %s303_s15 = sshll.u32 (!%p301_p2), %s390_s9, 1 }
   0x9   : > { %s487_s13 = smov (%p42_p1, %s485_s13), 0  ;;  %s302_s16 = sshll.u32 (!%p301_p2), %s56_s14, 2 }
   0xa   : > { %s63_s17 = sadd.s32 (!%p301_p2), %s386_s8, %s303_s15  ;;  %s58_s22 = scalar_lea.vmem (!%p301_p2), [#allocation1], %s302_s16 }
   0xb   : > { %s304_s18 = sshll.u32 (!%p301_p2), %s63_s17, 2 }
   0xc   : > { %s65_s21 = scalar_lea.vmem (!%p301_p2), %s476_s0, %s304_s18 }
   0xd   : > { %v81_v0 = vld [vmem:[%s65_s21] sm:$0xf] (!%p301_p2) }
   0xe   : > { %82 = vst [vmem:[%s58_s22] sm:$0xf] %v81_v0 }
   0xf PF: > { %p305_p3 = scmp.ge.s32.totalorder %s394_s10, 1  ;;  %p98_p4 = scmp.lt.s32.totalorder %s394_s10, 5 }
  0x11   : > { %p99_p5 = pnand %p305_p3, %p98_p4 }
  0x13   : > { %102 = sbr.rel (%p99_p5) target bundleno = 659 (0x293), region = 50 }
  0x1a   : > { %s449_s23 = sand.u32 1, %s299_s11   ;;  %v120_v1 = vlaneseq  ;;  %v396_v11 = vmov -1.0   ;;  %s309_s26 = sshll.u32 %s382_s7, 1 }
  0x1b   : > { %s306_s24 = sshll.u32 %s449_s23, 2  ;;  %s196_s27 = sadd.s32 %s378_s6, %s309_s26 }
  0x1c   : > { %s111_s25 = scalar_lea.vmem [#allocation1], %s306_s24  ;;  %v121_v3 = vand.u32 127, %v120_v1  ;;  %v124_v4 = vshrl.u32 %v120_v1, 7  ;;  %s115_s28 = scalar_lea.vmem [#allocation3], %s306_s24 }
  0x1d   : > { %v118_v2 = vld [vmem:[%s111_s25] sm:$0xf]  ;;  %s310_s29 = sshll.u32 %s196_s27, 2 }
  0x1e   : > { %119 = vst [vmem:[#allocation0] sm:$0xf] %v118_v2  ;;  %vm122_vm0 = vcmp.lt.s32.totalorder %v121_v3, 4  ;;  %vm131_vm1 = vcmp.le.s32.totalorder %v124_v4, %v121_v3  ;;  %vm126_vm2 = vcmp.eq.s32.totalorder %v124_v4, %v121_v3  ;;  %vm145_vm4 = vcmp.eq.s32.totalorder %v121_v3, 3  ;;  %s198_s3 = scalar_lea.vmem %s477_s1, %s310_s29 }
  0x1f   : > { %vm132_vm3 = vmand %vm131_vm1, %vm122_vm0  ;;  %vm142_vm5 = vcmp.eq.s32.totalorder %v121_v3, %v124_v4  ;;  %v146_v12 = vsel %vm145_vm4, 1.0, %v396_v11  ;;  %vm153_vm6 = vcmp.eq.s32.totalorder %v121_v3, 2  ;;  %vm163_vm7 = vcmp.eq.s32.totalorder %v121_v3, 1 }
  0x20   : > { %v147_v13 = vsel %vm142_vm5, %v146_v12, 0.0  ;;  %vm172_vm8 = vcmp.eq.s32.totalorder %v121_v3, 0 }
  0x25   : > { %v127_v5 = vld [vmem:[#allocation0] sm:$0xff] }
  0x26   : > { %v128_v6 = vsel %vm126_vm2, %v127_v5, 0.0  ;;  %v133_v7 = vsel %vm132_vm3, %v127_v5, 0.0 }
  0x27   : > { %129 = vadd.xlane.f32.xlu0 %v128_v6 }
  0xb4   : > { %v130_v8 = vpop.xlane.xlu0 %129 }
  0xb5   : > { %354 = vrcp.f32 %v130_v8  ;;  %vm179_vm9 = vweird.f32 %v130_v8 }
  0xbf   : > { %v355_v9 = vpop.eup %354 }
  0xc0   : > { %v135_v10 = vmul.f32 %v355_v9, %v133_v7 }
  0xc2   : > { %136 = vst [vmem:[#allocation4] sm:$0xff] %v135_v10 }
  0xc9   : > { %v149_v14 = vld [vmem:[#allocation4 + $0x2] ss:$0 sm:$0xff]  ;;  %v159_v17 = vld [vmem:[#allocation4 + $0x1] ss:$0 sm:$0xff]  ;;  %v168_v22 = vld [vmem:[#allocation4] ss:$0 sm:$0xff] }
  0xca   : > { %v150_v15 = vxor.u32 2147483648, %v149_v14  ;;  %v160_v19 = vxor.u32 2147483648, %v159_v17  ;;  %v169_v24 = vxor.u32 2147483648, %v168_v22 }
  0xcc   : > { %v154_v16 = vmul.f32 %v150_v15, %v147_v13 }
  0xce   : > { %155 = vadd.xlane.f32.xlu0 %v154_v16 }
 0x15b   : > { %v156_v18 = vpop.xlane.xlu0 %155 }
 0x15c   : > { %v157_v20 = vsel %vm153_vm6, %v156_v18, %v147_v13 }
 0x15d   : > { %v164_v21 = vmul.f32 %v160_v19, %v157_v20 }
 0x15f   : > { %165 = vadd.xlane.f32.xlu1 %v164_v21 }
 0x1ec   : > { %v166_v23 = vpop.xlane.xlu1 %165 }
 0x1ed   : > { %v167_v25 = vsel %vm163_vm7, %v166_v23, %v157_v20 }
 0x1ee   : > { %v173_v26 = vmul.f32 %v169_v24, %v167_v25 }
 0x1f0   : > { %174 = vadd.xlane.f32.xlu1 %v173_v26 }
 0x27d   : > { %v175_v27 = vpop.xlane.xlu1 %174 }
 0x27e   : > { %v176_v28 = vsel %vm172_vm8, %v175_v27, %v167_v25 }
 0x27f   : > { %v178_v29 = vmul.f32 %v355_v9, %v176_v28 }
 0x281   : > { %v180_v30 = vsel %vm179_vm9, %v176_v28, %v178_v29 }
 0x282   : > { %181 = vst [vmem:[#allocation2] sm:$0xff] %v180_v30 }
 0x289   : > { %v185_v31 = vld [vmem:[#allocation2] sm:$0xf] }
 0x28a   : > { %187 = vst [vmem:[%s115_s28] sm:$0xf] %v185_v31 }
 0x291   : > { %v214_v32 = vld [vmem:[%s115_s28] sm:$0xf] }
 0x292   : > { %215 = vst [vmem:[%s198_s3] sm:$0xf] %v214_v32 }
 0x293 PF: > { %s7_s10 = sadd.s32 1, %s394_s10   ;;  %s478_s6 = smov %s386_s8 }
 0x294   : > { %p4_p6 = scmp.ge.s32.totalorder %s7_s10, 6   ;;  %s479_s7 = smov %s390_s9 }
 0x295   : > { %s480_s8 = smov %s483_s12  ;;  %s481_s9 = smov %s487_s13 }
 0x296   :  { %6 = sbr.rel (!%p4_p6) target bundleno = 3 (0x3), region = 112 }

// kernel: custom-call.13
= control target key start
LH: loop header
LB: loop body
LE: loop exit
PB: predicated region body
PF: predicated region fallthrough
CT: control target
= control target key end

     0   :  { %s408_s6 = smov 0   ;;  %s410_s7 = smov 0   ;;  %s477_s0 = inlined_call_operand.vmem [shape: f32[2,2,1,4,4], index: 0, kind: input, shape index: {}]   ;;  %s478_s1 = inlined_call_operand.vmem [shape: f32[2,2,1,4,4], index: 1, kind: output, shape index: {}]  }
   0x1   :  { %s412_s8 = smov 0   ;;  %s414_s9 = smov 0  }
   0x2   :  { %s416_s10 = smov 0  }
   0x3 LB: > { %s300_s11 = sadd.s32 4294967295, %s395_s10   ;;  %s36_s12 = sadd.s32 1, %s387_s8  ;;  %s395_s10 = sphi %s416_s10, %s7_s10   ;;  %s391_s9 = sphi %s414_s9, %s482_s9   ;;  %s387_s8 = sphi %s412_s8, %s481_s8   ;;  %s383_s7 = sphi %s410_s7, %s480_s7   ;;  %s379_s6 = sphi %s408_s6, %s479_s6  }
   0x4   : > { %p38_p0 = scmp.ge.s32.totalorder %s36_s12, 2  ;;  %s40_s13 = sadd.s32 1, %s391_s9 }
   0x5   : > { %p302_p2 = scmp.ge.s32.totalorder %s395_s10, 4 }
   0x6   : > { %s484_s12 = smov (%p38_p0, %s36_s12), 0  ;;  %s486_s13 = smov (!%p38_p0, %s40_s13), %s391_s9 }
   0x7   : > { %p42_p1 = scmp.ge.s32.totalorder %s486_s13, 2  ;;  %54 = sbr.rel (%p302_p2) target bundleno = 15 (0xf), region = 16 }
   0x8   : > { %s56_s14 = sand.u32 (!%p302_p2), 1, %s395_s10   ;;  %s304_s15 = sshll.u32 (!%p302_p2), %s391_s9, 1 }
   0x9   : > { %s488_s13 = smov (%p42_p1, %s486_s13), 0  ;;  %s303_s16 = sshll.u32 (!%p302_p2), %s56_s14, 2 }
   0xa   : > { %s63_s17 = sadd.s32 (!%p302_p2), %s387_s8, %s304_s15  ;;  %s58_s22 = scalar_lea.vmem (!%p302_p2), [#allocation1], %s303_s16 }
   0xb   : > { %s305_s18 = sshll.u32 (!%p302_p2), %s63_s17, 2 }
   0xc   : > { %s65_s21 = scalar_lea.vmem (!%p302_p2), %s477_s0, %s305_s18 }
   0xd   : > { %v81_v0 = vld [vmem:[%s65_s21] sm:$0xf] (!%p302_p2) }
   0xe   : > { %82 = vst [vmem:[%s58_s22] sm:$0xf] %v81_v0 }
   0xf PF: > { %p306_p3 = scmp.ge.s32.totalorder %s395_s10, 1  ;;  %p98_p4 = scmp.lt.s32.totalorder %s395_s10, 5 }
  0x11   : > { %p99_p5 = pnand %p306_p3, %p98_p4 }
  0x13   : > { %102 = sbr.rel (%p99_p5) target bundleno = 659 (0x293), region = 50 }
  0x1a   : > { %s450_s23 = sand.u32 1, %s300_s11   ;;  %v120_v1 = vlaneseq  ;;  %v397_v11 = vmov -1.0   ;;  %s310_s26 = sshll.u32 %s383_s7, 1 }
  0x1b   : > { %s307_s24 = sshll.u32 %s450_s23, 2  ;;  %s197_s27 = sadd.s32 %s379_s6, %s310_s26 }
  0x1c   : > { %s111_s25 = scalar_lea.vmem [#allocation1], %s307_s24  ;;  %v121_v3 = vand.u32 127, %v120_v1  ;;  %v124_v4 = vshrl.u32 %v120_v1, 7  ;;  %s115_s28 = scalar_lea.vmem [#allocation3], %s307_s24 }
  0x1d   : > { %v118_v2 = vld [vmem:[%s111_s25] sm:$0xf]  ;;  %s311_s29 = sshll.u32 %s197_s27, 2 }
  0x1e   : > { %119 = vst [vmem:[#allocation0] sm:$0xf] %v118_v2  ;;  %vm122_vm0 = vcmp.lt.s32.totalorder %v121_v3, 4  ;;  %vm131_vm1 = vcmp.ge.s32.totalorder %v124_v4, %v121_v3  ;;  %vm126_vm2 = vcmp.eq.s32.totalorder %v124_v4, %v121_v3  ;;  %vm145_vm4 = vcmp.eq.s32.totalorder %v121_v3, 0  ;;  %s199_s3 = scalar_lea.vmem %s478_s1, %s311_s29 }
  0x1f   : > { %vm132_vm3 = vmand %vm131_vm1, %vm122_vm0  ;;  %vm142_vm5 = vcmp.eq.s32.totalorder %v121_v3, %v124_v4  ;;  %v146_v12 = vsel %vm145_vm4, 1.0, %v397_v11  ;;  %vm153_vm6 = vcmp.eq.s32.totalorder %v121_v3, 1  ;;  %vm163_vm7 = vcmp.eq.s32.totalorder %v121_v3, 2 }
  0x20   : > { %v147_v13 = vsel %vm142_vm5, %v146_v12, 0.0  ;;  %vm173_vm8 = vcmp.eq.s32.totalorder %v121_v3, 3 }
  0x25   : > { %v127_v5 = vld [vmem:[#allocation0] sm:$0xff] }
  0x26   : > { %v128_v6 = vsel %vm126_vm2, %v127_v5, 0.0  ;;  %v133_v7 = vsel %vm132_vm3, %v127_v5, 0.0 }
  0x27   : > { %129 = vadd.xlane.f32.xlu0 %v128_v6 }
  0xb4   : > { %v130_v8 = vpop.xlane.xlu0 %129 }
  0xb5   : > { %355 = vrcp.f32 %v130_v8  ;;  %vm180_vm9 = vweird.f32 %v130_v8 }
  0xbf   : > { %v356_v9 = vpop.eup %355 }
  0xc0   : > { %v135_v10 = vmul.f32 %v356_v9, %v133_v7 }
  0xc2   : > { %136 = vst [vmem:[#allocation4] sm:$0xff] %v135_v10 }
  0xc9   : > { %v149_v14 = vld [vmem:[#allocation4 + $0x1] ss:$0 sm:$0xff]  ;;  %v159_v17 = vld [vmem:[#allocation4 + $0x2] ss:$0 sm:$0xff]  ;;  %v169_v22 = vld [vmem:[#allocation4 + $0x3] ss:$0 sm:$0xff] }
  0xca   : > { %v150_v15 = vxor.u32 2147483648, %v149_v14  ;;  %v160_v19 = vxor.u32 2147483648, %v159_v17  ;;  %v170_v24 = vxor.u32 2147483648, %v169_v22 }
  0xcc   : > { %v154_v16 = vmul.f32 %v150_v15, %v147_v13 }
  0xce   : > { %155 = vadd.xlane.f32.xlu0 %v154_v16 }
 0x15b   : > { %v156_v18 = vpop.xlane.xlu0 %155 }
 0x15c   : > { %v157_v20 = vsel %vm153_vm6, %v156_v18, %v147_v13 }
 0x15d   : > { %v164_v21 = vmul.f32 %v160_v19, %v157_v20 }
 0x15f   : > { %165 = vadd.xlane.f32.xlu1 %v164_v21 }
 0x1ec   : > { %v166_v23 = vpop.xlane.xlu1 %165 }
 0x1ed   : > { %v167_v25 = vsel %vm163_vm7, %v166_v23, %v157_v20 }
 0x1ee   : > { %v174_v26 = vmul.f32 %v170_v24, %v167_v25 }
 0x1f0   : > { %175 = vadd.xlane.f32.xlu1 %v174_v26 }
 0x27d   : > { %v176_v27 = vpop.xlane.xlu1 %175 }
 0x27e   : > { %v177_v28 = vsel %vm173_vm8, %v176_v27, %v167_v25 }
 0x27f   : > { %v179_v29 = vmul.f32 %v356_v9, %v177_v28 }
 0x281   : > { %v181_v30 = vsel %vm180_vm9, %v177_v28, %v179_v29 }
 0x282   : > { %182 = vst [vmem:[#allocation2] sm:$0xff] %v181_v30 }
 0x289   : > { %v186_v31 = vld [vmem:[#allocation2] sm:$0xf] }
 0x28a   : > { %188 = vst [vmem:[%s115_s28] sm:$0xf] %v186_v31 }
 0x291   : > { %v215_v32 = vld [vmem:[%s115_s28] sm:$0xf] }
 0x292   : > { %216 = vst [vmem:[%s199_s3] sm:$0xf] %v215_v32 }
 0x293 PF: > { %s7_s10 = sadd.s32 1, %s395_s10   ;;  %s479_s6 = smov %s387_s8 }
 0x294   : > { %p4_p6 = scmp.ge.s32.totalorder %s7_s10, 6   ;;  %s480_s7 = smov %s391_s9 }
 0x295   : > { %s481_s8 = smov %s484_s12  ;;  %s482_s9 = smov %s488_s13 }
 0x296   :  { %6 = sbr.rel (!%p4_p6) target bundleno = 3 (0x3), region = 113 }

// kernel: base_transform_forward.2
= control target key start
LH: loop header
LB: loop body
LE: loop exit
PB: predicated region body
PF: predicated region fallthrough
CT: control target
= control target key end

     0   :  { %v379_v0 = vmov 17   ;;  %v380_v1 = vmov 19   ;;  %v381_v3 = vmov 18   ;;  %v382_v4 = vmov 16   ;;  %s567_s1 = inlined_call_operand.vmem [shape: f32[8,20], index: 1, kind: input, shape index: {}]   ;;  %s568_s0 = inlined_call_operand.vmem [shape: f32[3,256], index: 0, kind: input, shape index: {}]   ;;  %s569_s2 = inlined_call_operand.vmem [shape: s32[256,8], index: 2, kind: output, shape index: {}]  }
   0x1   :  { %362 = vset.pattern.permute.xlu1 %v379_v0  ;;  %360 = vset.pattern.permute.xlu0 %v380_v1  ;;  %v11_v2 = vld [vmem:[%s567_s1] sm:$0xff]  ;;  %v383_v5 = vmov 8   ;;  %v384_v6 = vmov 9   ;;  %v385_v7 = vmov 0   ;;  %v386_v8 = vmov 4  }
   0x2   :  { %54 = vperm.xlu1 %362, %v11_v2   ;;  %36 = vperm.xlu0 %360, %v11_v2   ;;  %v387_v9 = vmov 1   ;;  %v388_v10 = vmov 2   ;;  %v389_v11 = vmov 5   ;;  %v390_v12 = vmov 3  }
   0x3   :  { %v391_v13 = vmov 10   ;;  %v392_v14 = vmov 6   ;;  %v393_v15 = vmov 11   ;;  %v394_v16 = vmov 7  }
   0x4   :  { %v18_v17 = vlaneseq  ;;  %v12_v21 = vld [vmem:[%s568_s0] ss:$4 sm:$0x3]  ;;  %v324_v26 = vld [vmem:[%s568_s0 + $0x1] ss:$4 sm:$0x3] }
   0x5   :  { %v325_v31 = vld [vmem:[%s568_s0 + $0x2] ss:$4 sm:$0x3] }
   0x6   :  { %363 = vset.pattern.permute.xlu1 %v381_v3  ;;  %361 = vset.pattern.permute.xlu0 %v382_v4  ;;  %v414_v18 = vshrl.u32 %v18_v17, 7 }
   0x7   :  { %73 = vperm.xlu1 %363, %v11_v2   ;;  %30 = vperm.xlu0 %361, %v11_v2  }
   0x8   :  { %v24_v22 = vsub.s32 1, %v414_v18  ;;  %v20_v23 = vsub.s32 0, %v414_v18  ;;  %vm210_vm11 = vcmp.lt.s32.totalorder %v414_v18, 4 }
   0xa   :  { %v25_v27 = vrot.slane %v12_v21, %v24_v22  ;;  %v21_v28 = vrot.slane %v12_v21, %v20_v23  ;;  %v46_v29 = vrot.slane %v324_v26, %v20_v23  ;;  %v50_v30 = vrot.slane %v324_v26, %v24_v22 }
   0xb   :  { %364 = vset.pattern.permute.xlu1 %v383_v5  ;;  %365 = vset.pattern.permute.xlu0 %v384_v6  ;;  %v69_v37 = vrot.slane %v325_v31, %v24_v22  ;;  %v65_v40 = vrot.slane %v325_v31, %v20_v23 }
   0xc   :  { %139 = vperm.xlu1 %364, %v11_v2   ;;  %145 = vperm.xlu0 %365, %v11_v2  }
  0x10   :  { %366 = vset.pattern.permute.xlu1 %v385_v7  ;;  %368 = vset.pattern.permute.xlu0 %v386_v8 }
  0x11   :  { %83 = vperm.xlu1 %366, %v11_v2   ;;  %111 = vperm.xlu0 %368, %v11_v2  }
  0x15   :  { %367 = vset.pattern.permute.xlu1 %v387_v9  ;;  %371 = vset.pattern.permute.xlu0 %v388_v10 }
  0x16   :  { %89 = vperm.xlu1 %367, %v11_v2   ;;  %97 = vperm.xlu0 %371, %v11_v2  }
  0x1a   :  { %369 = vset.pattern.permute.xlu1 %v389_v11  ;;  %374 = vset.pattern.permute.xlu0 %v390_v12 }
  0x1b   :  { %117 = vperm.xlu1 %369, %v11_v2   ;;  %105 = vperm.xlu0 %374, %v11_v2  }
  0x1f   :  { %370 = vset.pattern.permute.xlu1 %v391_v13 }
  0x20   :  { %153 = vperm.xlu1 %370, %v11_v2  }
  0x24   :  { %372 = vset.pattern.permute.xlu1 %v392_v14 }
  0x25   :  { %125 = vperm.xlu1 %372, %v11_v2  }
  0x29   :  { %373 = vset.pattern.permute.xlu1 %v393_v15 }
  0x2a   :  { %161 = vperm.xlu1 %373, %v11_v2  }
  0x2e   :  { %375 = vset.pattern.permute.xlu1 %v394_v16 }
  0x2f   :  { %133 = vperm.xlu1 %375, %v11_v2  }
  0x81   :  { %v55_v19 = vpop.permute.xlu1 %54  ;;  %v37_v20 = vpop.permute.xlu0 %36 }
  0x82   :  { %377 = vrcp.f32 %v37_v20  ;;  %v57_v38 = vadd.f32 %v55_v19, %v46_v29  ;;  %v58_v39 = vadd.f32 %v55_v19, %v50_v30 }
  0x86   :  { %v74_v24 = vpop.permute.xlu1 %73  ;;  %v31_v25 = vpop.permute.xlu0 %30 }
  0x87   :  { %v34_v32 = vadd.f32 %v31_v25, %v25_v27  ;;  %v33_v35 = vadd.f32 %v31_v25, %v21_v28  ;;  %v77_v46 = vadd.f32 %v74_v24, %v69_v37  ;;  %v76_v47 = vadd.f32 %v74_v24, %v65_v40 }
  0x8b   :  { %v140_v33 = vpop.permute.xlu1 %139  ;;  %v146_v36 = vpop.permute.xlu0 %145 }
  0x8c   :  { %v378_v34 = vpop.eup %377 }
  0x8d   :  { %v41_v41 = vmul.f32 %v378_v34, %v34_v32  ;;  %v40_v42 = vmul.f32 %v378_v34, %v33_v35  ;;  %v59_v43 = vmul.f32 %v378_v34, %v57_v38  ;;  %v60_v44 = vmul.f32 %v378_v34, %v58_v39 }
  0x8f   :  { %v79_v49 = vmul.f32 %v77_v46, %v41_v41  ;;  %v78_v50 = vmul.f32 %v76_v47, %v40_v42  ;;  %v80_v51 = vmul.f32 %v76_v47, %v59_v43  ;;  %v81_v52 = vmul.f32 %v77_v46, %v60_v44 }
  0x90   :  { %v84_v45 = vpop.permute.xlu1 %83  ;;  %v112_v48 = vpop.permute.xlu0 %111 }
  0x91   :  { %v87_v56 = vmul.f32 %v84_v45, %v79_v49  ;;  %v86_v57 = vmul.f32 %v84_v45, %v78_v50  ;;  %v142_v4 = vmul.f32 %v140_v33, %v78_v50  ;;  %v143_v6 = vmul.f32 %v140_v33, %v79_v49 }
  0x92   :  { %v148_v7 = vmul.f32 %v146_v36, %v80_v51  ;;  %v149_v8 = vmul.f32 %v146_v36, %v81_v52  ;;  %v114_v21 = vmul.f32 %v112_v48, %v78_v50  ;;  %v115_v24 = vmul.f32 %v112_v48, %v79_v49 }
  0x94   :  { %v150_v14 = vadd.f32 %v148_v7, %v142_v4  ;;  %v151_v16 = vadd.f32 %v149_v8, %v143_v6 }
  0x95   :  { %v90_v53 = vpop.permute.xlu1 %89  ;;  %v98_v58 = vpop.permute.xlu0 %97 }
  0x96   :  { %v92_v54 = vmul.f32 %v90_v53, %v80_v51  ;;  %v93_v55 = vmul.f32 %v90_v53, %v81_v52  ;;  %v101_v62 = vmul.f32 %v98_v58, %v77_v46  ;;  %v100_v63 = vmul.f32 %v98_v58, %v76_v47 }
  0x98   :  { %v95_v59 = vadd.f32 %v93_v55, %v87_v56  ;;  %v94_v60 = vadd.f32 %v92_v54, %v86_v57 }
  0x9a   :  { %v118_v61 = vpop.permute.xlu1 %117  ;;  %v103_v0 = vadd.f32 %v101_v62, %v95_v59  ;;  %v106_v1 = vpop.permute.xlu0 %105  ;;  %v102_v2 = vadd.f32 %v100_v63, %v94_v60 }
  0x9b   :  { %v120_v19 = vmul.f32 %v118_v61, %v80_v51  ;;  %v121_v20 = vmul.f32 %v118_v61, %v81_v52 }
  0x9c   :  { %v109_v5 = vadd.f32 %v106_v1, %v103_v0  ;;  %v108_v9 = vadd.f32 %v106_v1, %v102_v2 }
  0x9d   :  { %v122_v32 = vadd.f32 %v120_v19, %v114_v21  ;;  %v123_v33 = vadd.f32 %v121_v20, %v115_v24 }
  0x9e   :  { %v327_v13 = vadd.f32 40.0, %v109_v5  ;;  %v326_v17 = vadd.f32 40.0, %v108_v9 }
  0x9f   :  { %v154_v3 = vpop.permute.xlu1 %153 }
  0xa0   :  { %v156_v10 = vmul.f32 %v154_v3, %v76_v47  ;;  %v157_v11 = vmul.f32 %v154_v3, %v77_v46  ;;  %v170_v25 = vmul.f32 0.1, %v327_v13  ;;  %v169_v29 = vmul.f32 0.1, %v326_v17 }
  0xa2   :  { %v158_v22 = vadd.f32 %v156_v10, %v150_v14  ;;  %v159_v23 = vadd.f32 %v157_v11, %v151_v16  ;;  %v334_v36 = vtrunc.f32 %v170_v25  ;;  %v332_v39 = vtrunc.f32 %v169_v29 }
  0xa4   :  { %v126_v12 = vpop.permute.xlu1 %125  ;;  %v333_v50 = vcvt.f32.s32 %v332_v39 }
  0xa5   :  { %v128_v26 = vmul.f32 %v126_v12, %v76_v47  ;;  %v129_v27 = vmul.f32 %v126_v12, %v77_v46  ;;  %v335_v46 = vcvt.f32.s32 %v334_v36 }
  0xa6   :  { %vm186_vm2 = vcmp.ge.s32.totalorder %v333_v50, 0  ;;  %vm188_vm3 = vcmp.lt.s32.totalorder %v333_v50, 8 }
  0xa7   :  { %v130_v37 = vadd.f32 %v128_v26, %v122_v32  ;;  %v131_v38 = vadd.f32 %v129_v27, %v123_v33  ;;  %vm187_vm0 = vcmp.ge.s32.totalorder %v335_v46, 0  ;;  %vm189_vm1 = vcmp.lt.s32.totalorder %v335_v46, 8  ;;  %vm427_vm7 = vmand %vm186_vm2, %vm188_vm3 }
  0xa8   :  { %vm191_vm4 = vmand %vm187_vm0, %vm189_vm1 }
  0xa9   :  { %v162_v28 = vpop.permute.xlu1 %161 }
  0xaa   :  { %v164_v30 = vadd.f32 %v162_v28, %v158_v22  ;;  %v165_v31 = vadd.f32 %v162_v28, %v159_v23 }
  0xac   :  { %v330_v34 = vadd.f32 20.0, %v164_v30  ;;  %v331_v35 = vadd.f32 20.0, %v165_v31 }
  0xae   :  { %v182_v40 = vmul.f32 0.05, %v330_v34  ;;  %v183_v41 = vmul.f32 0.05, %v331_v35  ;;  %v134_v42 = vpop.permute.xlu1 %133 }
  0xaf   :  { %v136_v43 = vadd.f32 %v134_v42, %v130_v37  ;;  %v137_v44 = vadd.f32 %v134_v42, %v131_v38 }
  0xb0   :  { %v340_v45 = vtrunc.f32 %v182_v40  ;;  %v342_v47 = vtrunc.f32 %v183_v41 }
  0xb1   :  { %v328_v48 = vadd.f32 40.0, %v136_v43  ;;  %v329_v49 = vadd.f32 40.0, %v137_v44 }
  0xb2   :  { %v341_v51 = vcvt.f32.s32 %v340_v45  ;;  %v343_v52 = vcvt.f32.s32 %v342_v47 }
  0xb3   :  { %v175_v53 = vmul.f32 0.1, %v328_v48  ;;  %v176_v54 = vmul.f32 0.1, %v329_v49 }
  0xb4   :  { %v214_v55 = vmul.u32 8, %v343_v52  ;;  %v213_v59 = vmul.u32 8, %v341_v51  ;;  %vm201_vm10 = vcmp.ge.s32.totalorder %v343_v52, 0  ;;  %vm205_vm13 = vcmp.lt.s32.totalorder %v343_v52, 2 }
  0xb5   :  { %v336_v56 = vtrunc.f32 %v175_v53  ;;  %v338_v57 = vtrunc.f32 %v176_v54 }
  0xb6   :  { %v216_v58 = vadd.s32 %v335_v46, %v214_v55  ;;  %v215_v0 = vadd.s32 %v333_v50, %v213_v59 }
  0xb7   :  { %v339_v60 = vcvt.f32.s32 %v338_v57  ;;  %v337_v61 = vcvt.f32.s32 %v336_v56 }
  0xb8   :  { %v218_v62 = vmul.u32 8, %v216_v58  ;;  %v217_v2 = vmul.u32 8, %v215_v0 }
  0xb9   :  { %vm193_vm5 = vcmp.ge.s32.totalorder %v339_v60, 0  ;;  %vm197_vm6 = vcmp.lt.s32.totalorder %v339_v60, 8  ;;  %vm192_vm14 = vcmp.ge.s32.totalorder %v337_v61, 0  ;;  %vm196_vm0 = vcmp.lt.s32.totalorder %v337_v61, 8 }
  0xba   :  { %vm195_vm8 = vmand %vm191_vm4, %vm193_vm5  ;;  %v220_v1 = vadd.s32 %v339_v60, %v218_v62  ;;  %vm200_vm4 = vcmp.ge.s32.totalorder %v341_v51, 0  ;;  %v219_v4 = vadd.s32 %v337_v61, %v217_v2 }
  0xbb   :  { %vm199_vm9 = vmand %vm195_vm8, %vm197_vm6  ;;  %vm204_vm6 = vcmp.lt.s32.totalorder %v341_v51, 2 }
  0xbc   :  { %vm203_vm12 = vmand %vm199_vm9, %vm201_vm10  ;;  %vm287_vm10 = vcmask 64512  }
  0xbd   :  { %vm207_vm15 = vmand %vm203_vm12, %vm205_vm13 }
  0xbe   :  { %vm212_vm1 = vmand %vm207_vm15, %vm210_vm11 }
  0xbf   :  { %v222_v3 = vsel %vm212_vm1, %v220_v1, 1073741824  ;;  %vm194_vm2 = vmand %vm427_vm7, %vm192_vm14 }
  0xc0   :  { %255 = vxpose.xlu0.b32.start.end [1/1] (short) %v222_v3, 128  ;;  %vm198_vm3 = vmand %vm194_vm2, %vm196_vm0 }
  0xc1   :  { %vm202_vm5 = vmand %vm198_vm3, %vm200_vm4 }
  0xc2   :  { %vm206_vm8 = vmand %vm202_vm5, %vm204_vm6 }
  0xc3   :  { %vm211_vm9 = vmand %vm206_vm8, %vm210_vm11 }
  0xc4   :  { %v221_v5 = vsel %vm211_vm9, %v219_v4, 1073741824 }
  0xc5   :  { %223 = vxpose.xlu1.b32.start.end [1/1] (short) %v221_v5, 128 }
  0xe9   :  { %376 = vset.pattern.permute.xlu0 %v393_v15 }
 0x140   :  { %v271_v6 = vpop.trf.xlu0 }
 0x141   :  { %304 = vst.msk [vmem:[%s569_s2 + $0x80] sm:$0xff] %vm287_vm10, %v271_v6 }
 0x144   :  { %v272_v7 = vpop.trf.xlu0 }
 0x145   :  { %v239_v8 = vpop.trf.xlu1  ;;  %305 = vst.msk [vmem:[%s569_s2 + $0x88] sm:$0xff] %vm287_vm10, %v272_v7 }
 0x146   :  { %288 = vst.msk [vmem:[%s569_s2] sm:$0xff] %vm287_vm10, %v239_v8 }
 0x148   :  { %v273_v15 = vpop.trf.xlu0 }
 0x149   :  { %v240_v18 = vpop.trf.xlu1  ;;  %306 = vst.msk [vmem:[%s569_s2 + $0x90] sm:$0xff] %vm287_vm10, %v273_v15 }
 0x14a   :  { %289 = vst.msk [vmem:[%s569_s2 + $0x8] sm:$0xff] %vm287_vm10, %v240_v18 }
 0x14c   :  { %v274_v9 = vpop.trf.xlu0 }
 0x14d   :  { %v241_v10 = vpop.trf.xlu1  ;;  %307 = vst.msk [vmem:[%s569_s2 + $0x98] sm:$0xff] %vm287_vm10, %v274_v9 }
 0x14e   :  { %290 = vst.msk [vmem:[%s569_s2 + $0x10] sm:$0xff] %vm287_vm10, %v241_v10 }
 0x150   :  { %v275_v11 = vpop.trf.xlu0 }
 0x151   :  { %v242_v12 = vpop.trf.xlu1  ;;  %308 = vst.msk [vmem:[%s569_s2 + $0xa0] sm:$0xff] %vm287_vm10, %v275_v11 }
 0x152   :  { %291 = vst.msk [vmem:[%s569_s2 + $0x18] sm:$0xff] %vm287_vm10, %v242_v12 }
 0x154   :  { %v276_v13 = vpop.trf.xlu0 }
 0x155   :  { %v243_v14 = vpop.trf.xlu1  ;;  %309 = vst.msk [vmem:[%s569_s2 + $0xa8] sm:$0xff] %vm287_vm10, %v276_v13 }
 0x156   :  { %292 = vst.msk [vmem:[%s569_s2 + $0x20] sm:$0xff] %vm287_vm10, %v243_v14 }
 0x158   :  { %v277_v16 = vpop.trf.xlu0 }
 0x159   :  { %v244_v17 = vpop.trf.xlu1  ;;  %310 = vst.msk [vmem:[%s569_s2 + $0xb0] sm:$0xff] %vm287_vm10, %v277_v16 }
 0x15a   :  { %293 = vst.msk [vmem:[%s569_s2 + $0x28] sm:$0xff] %vm287_vm10, %v244_v17 }
 0x15c   :  { %v278_v19 = vpop.trf.xlu0 }
 0x15d   :  { %v245_v20 = vpop.trf.xlu1  ;;  %311 = vst.msk [vmem:[%s569_s2 + $0xb8] sm:$0xff] %vm287_vm10, %v278_v19 }
 0x15e   :  { %294 = vst.msk [vmem:[%s569_s2 + $0x30] sm:$0xff] %vm287_vm10, %v245_v20 }
 0x160   :  { %v279_v21 = vpop.trf.xlu0 }
 0x161   :  { %v246_v22 = vpop.trf.xlu1  ;;  %312 = vst.msk [vmem:[%s569_s2 + $0xc0] sm:$0xff] %vm287_vm10, %v279_v21 }
 0x162   :  { %295 = vst.msk [vmem:[%s569_s2 + $0x38] sm:$0xff] %vm287_vm10, %v246_v22 }
 0x164   :  { %v280_v23 = vpop.trf.xlu0 }
 0x165   :  { %v247_v24 = vpop.trf.xlu1  ;;  %313 = vst.msk [vmem:[%s569_s2 + $0xc8] sm:$0xff] %vm287_vm10, %v280_v23 }
 0x166   :  { %296 = vst.msk [vmem:[%s569_s2 + $0x40] sm:$0xff] %vm287_vm10, %v247_v24 }
 0x168   :  { %v281_v25 = vpop.trf.xlu0 }
 0x169   :  { %v248_v26 = vpop.trf.xlu1  ;;  %314 = vst.msk [vmem:[%s569_s2 + $0xd0] sm:$0xff] %vm287_vm10, %v281_v25 }
 0x16a   :  { %297 = vst.msk [vmem:[%s569_s2 + $0x48] sm:$0xff] %vm287_vm10, %v248_v26 }
 0x16c   :  { %v282_v27 = vpop.trf.xlu0 }
 0x16d   :  { %v249_v28 = vpop.trf.xlu1  ;;  %315 = vst.msk [vmem:[%s569_s2 + $0xd8] sm:$0xff] %vm287_vm10, %v282_v27 }
 0x16e   :  { %298 = vst.msk [vmem:[%s569_s2 + $0x50] sm:$0xff] %vm287_vm10, %v249_v28 }
 0x170   :  { %v283_v29 = vpop.trf.xlu0 }
 0x171   :  { %v250_v30 = vpop.trf.xlu1  ;;  %316 = vst.msk [vmem:[%s569_s2 + $0xe0] sm:$0xff] %vm287_vm10, %v283_v29 }
 0x172   :  { %299 = vst.msk [vmem:[%s569_s2 + $0x58] sm:$0xff] %vm287_vm10, %v250_v30 }
 0x174   :  { %v284_v31 = vpop.trf.xlu0 }
 0x175   :  { %v251_v32 = vpop.trf.xlu1  ;;  %317 = vst.msk [vmem:[%s569_s2 + $0xe8] sm:$0xff] %vm287_vm10, %v284_v31 }
 0x176   :  { %300 = vst.msk [vmem:[%s569_s2 + $0x60] sm:$0xff] %vm287_vm10, %v251_v32 }
 0x178   :  { %v285_v33 = vpop.trf.xlu0 }
 0x179   :  { %v252_v34 = vpop.trf.xlu1  ;;  %318 = vst.msk [vmem:[%s569_s2 + $0xf0] sm:$0xff] %vm287_vm10, %v285_v33 }
 0x17a   :  { %301 = vst.msk [vmem:[%s569_s2 + $0x68] sm:$0xff] %vm287_vm10, %v252_v34 }
 0x17c   :  { %v286_v35 = vpop.trf.xlu0 }
 0x17d   :  { %v253_v36 = vpop.trf.xlu1  ;;  %319 = vst.msk [vmem:[%s569_s2 + $0xf8] sm:$0xff] %vm287_vm10, %v286_v35 }
 0x17e   :  { %302 = vst.msk [vmem:[%s569_s2 + $0x70] sm:$0xff] %vm287_vm10, %v253_v36 }
 0x181   :  { %v254_v37 = vpop.trf.xlu1 }
 0x182   :  { %303 = vst.msk [vmem:[%s569_s2 + $0x78] sm:$0xff] %vm287_vm10, %v254_v37 }

// kernel: base_transform_forward.3
= control target key start
LH: loop header
LB: loop body
LE: loop exit
PB: predicated region body
PF: predicated region fallthrough
CT: control target
= control target key end

     0   :  { %v2333_v0 = vmov 0   ;;  %v2334_v6 = vmov 1   ;;  %v2335_v22 = vmov 2   ;;  %v2336_v33 = vmov 3   ;;  %s3364_s0 = inlined_call_operand.vmem [shape: s32[256,8], index: 0, kind: input, shape index: {}]   ;;  %s3365_s1 = inlined_call_operand.vmem [shape: f32[8,1024], index: 1, kind: input, shape index: {}]   ;;  %s3366_s2 = inlined_call_operand.vmem [shape: f32[8,256], index: 2, kind: output, shape index: {}]  }
   0x1   :  { %2288 = vset.pattern.permute.xlu1 %v2333_v0  ;;  %2287 = vset.pattern.permute.xlu0 %v2333_v0  ;;  %v2358_v1 = vld [vmem:[%s3364_s0 + $0x10] sm:$0xff]  ;;  %v2363_v2 = vld [vmem:[%s3364_s0] sm:$0xff]  ;;  %v2370_v3 = vld [vmem:[%s3364_s0 + $0x18] sm:$0xff]  ;;  %v12_v55 = vlaneseq }
   0x2   :  { %57 = vperm.xlu1 %2288, %v2358_v1   ;;  %51 = vperm.xlu0 %2287, %v2363_v2   ;;  %v2375_v4 = vld [vmem:[%s3364_s0 + $0x8] sm:$0xff]  ;;  %v2390_v7 = vld [vmem:[%s3364_s0 + $0x38] sm:$0xff]  ;;  %v2395_v8 = vld [vmem:[%s3364_s0 + $0x20] sm:$0xff] }
   0x3   :  { %v2382_v5 = vld [vmem:[%s3364_s0 + $0x28] sm:$0xff]  ;;  %v2407_v10 = vld [vmem:[%s3364_s0 + $0x40] sm:$0xff]  ;;  %v2414_v11 = vld [vmem:[%s3364_s0 + $0x58] sm:$0xff]  ;;  %v2655_v58 = vand.u32 127, %v12_v55 }
   0x4   :  { %v2402_v9 = vld [vmem:[%s3364_s0 + $0x48] sm:$0xff]  ;;  %v2419_v12 = vld [vmem:[%s3364_s0 + $0x60] sm:$0xff]  ;;  %v2438_v15 = vld [vmem:[%s3364_s0 + $0x78] sm:$0xff] }
   0x5   :  { %v2426_v13 = vld [vmem:[%s3364_s0 + $0x68] sm:$0xff]  ;;  %v2431_v14 = vld [vmem:[%s3364_s0 + $0x80] sm:$0xff]  ;;  %v2462_v19 = vld [vmem:[%s3364_s0 + $0x98] sm:$0xff]  ;;  %v2664_v61 = vadd.s32 128, %v2655_v58 }
   0x6   :  { %60 = vperm.xlu1 %2288, %v2370_v3   ;;  %54 = vperm.xlu0 %2287, %v2375_v4   ;;  %v2443_v16 = vld [vmem:[%s3364_s0 + $0xa0] sm:$0xff]  ;;  %v2450_v17 = vld [vmem:[%s3364_s0 + $0x88] sm:$0xff]  ;;  %v2481_v23 = vld [vmem:[%s3364_s0 + $0xb8] sm:$0xff] }
   0x7   :  { %v2455_v18 = vld [vmem:[%s3364_s0 + $0xc0] sm:$0xff]  ;;  %v2474_v21 = vld [vmem:[%s3364_s0 + $0xa8] sm:$0xff]  ;;  %v2496_v25 = vld [vmem:[%s3364_s0 + $0x30] sm:$0xff]  ;;  %v2673_v63 = vadd.s32 4294967168, %v2664_v61 }
   0x8   :  { %v2467_v20 = vld [vmem:[%s3364_s0 + $0xe0] sm:$0xff]  ;;  %v2488_v24 = vld [vmem:[%s3364_s0 + $0xc8] sm:$0xff]  ;;  %v2507_v26 = vld [vmem:[%s3364_s0 + $0x50] sm:$0xff] }
   0x9   :  { %v2517_v27 = vld [vmem:[%s3364_s0 + $0x70] sm:$0xff]  ;;  %v2554_v31 = vld [vmem:[%s3364_s0 + $0xe8] sm:$0xff] }
   0xa   :  { %66 = vperm.xlu1 %2288, %v2382_v5   ;;  %2289 = vset.pattern.permute.xlu0 %v2334_v6  ;;  %v2526_v28 = vld [vmem:[%s3364_s0 + $0x90] sm:$0xff] }
   0xb   :  { %341 = vperm.xlu0 %2289, %v2363_v2   ;;  %v2537_v29 = vld [vmem:[%s3364_s0 + $0xb0] sm:$0xff] }
   0xc   :  { %v2547_v30 = vld [vmem:[%s3364_s0 + $0xd0] sm:$0xff] }
   0xd   :  { %v2561_v32 = vld [vmem:[%s3364_s0 + $0xf0] sm:$0xff] }
   0xe   :  { %72 = vperm.xlu1 %2288, %v2390_v7  }
   0xf   :  { %353 = vperm.xlu0 %2289, %v2395_v8  }
  0x12   :  { %78 = vperm.xlu1 %2288, %v2402_v9  }
  0x13   :  { %365 = vperm.xlu0 %2289, %v2407_v10  }
  0x16   :  { %84 = vperm.xlu1 %2288, %v2414_v11  }
  0x17   :  { %377 = vperm.xlu0 %2289, %v2419_v12  }
  0x1a   :  { %90 = vperm.xlu1 %2288, %v2426_v13  }
  0x1b   :  { %389 = vperm.xlu0 %2289, %v2431_v14  }
  0x1e   :  { %96 = vperm.xlu1 %2288, %v2438_v15  }
  0x1f   :  { %401 = vperm.xlu0 %2289, %v2443_v16  }
  0x22   :  { %102 = vperm.xlu1 %2288, %v2450_v17  }
  0x23   :  { %413 = vperm.xlu0 %2289, %v2455_v18  }
  0x26   :  { %108 = vperm.xlu1 %2288, %v2462_v19  }
  0x27   :  { %425 = vperm.xlu0 %2289, %v2467_v20  }
  0x2a   :  { %114 = vperm.xlu1 %2288, %v2474_v21  }
  0x2b   :  { %2318 = vset.pattern.permute.xlu0 %v2335_v22 }
  0x2c   :  { %778 = vperm.xlu0 %2318, %v2375_v4  }
  0x2e   :  { %120 = vperm.xlu1 %2288, %v2481_v23  }
  0x30   :  { %781 = vperm.xlu0 %2318, %v2358_v1  }
  0x32   :  { %126 = vperm.xlu1 %2288, %v2488_v24  }
  0x34   :  { %790 = vperm.xlu0 %2318, %v2382_v5  }
  0x36   :  { %2290 = vset.pattern.permute.xlu1 %v2334_v6 }
  0x37   :  { %344 = vperm.xlu1 %2290, %v2375_v4  }
  0x38   :  { %793 = vperm.xlu0 %2318, %v2496_v25  }
  0x3b   :  { %2291 = vset.pattern.permute.xlu1 %v2335_v22 }
  0x3c   :  { %775 = vperm.xlu1 %2291, %v2363_v2   ;;  %802 = vperm.xlu0 %2318, %v2402_v9  }
  0x40   :  { %2292 = vset.pattern.permute.xlu1 %v2334_v6  ;;  %805 = vperm.xlu0 %2318, %v2507_v26  }
  0x41   :  { %347 = vperm.xlu1 %2292, %v2358_v1  }
  0x44   :  { %814 = vperm.xlu0 %2318, %v2426_v13  }
  0x45   :  { %350 = vperm.xlu1 %2292, %v2370_v3  }
  0x48   :  { %817 = vperm.xlu0 %2318, %v2517_v27  }
  0x49   :  { %2293 = vset.pattern.permute.xlu1 %v2335_v22 }
  0x4a   :  { %784 = vperm.xlu1 %2293, %v2370_v3  }
  0x4c   :  { %826 = vperm.xlu0 %2318, %v2450_v17  }
  0x4e   :  { %2294 = vset.pattern.permute.xlu1 %v2334_v6 }
  0x4f   :  { %356 = vperm.xlu1 %2294, %v2382_v5  }
  0x50   :  { %829 = vperm.xlu0 %2318, %v2526_v28  }
  0x53   :  { %2295 = vset.pattern.permute.xlu1 %v2335_v22 }
  0x54   :  { %787 = vperm.xlu1 %2295, %v2395_v8   ;;  %838 = vperm.xlu0 %2318, %v2474_v21  }
  0x58   :  { %2296 = vset.pattern.permute.xlu1 %v2334_v6  ;;  %841 = vperm.xlu0 %2318, %v2537_v29  }
  0x59   :  { %359 = vperm.xlu1 %2296, %v2496_v25  }
  0x5c   :  { %850 = vperm.xlu0 %2318, %v2488_v24  }
  0x5d   :  { %362 = vperm.xlu1 %2296, %v2390_v7  }
  0x60   :  { %853 = vperm.xlu0 %2318, %v2547_v30  }
  0x61   :  { %2297 = vset.pattern.permute.xlu1 %v2335_v22 }
  0x62   :  { %796 = vperm.xlu1 %2297, %v2390_v7  }
  0x64   :  { %862 = vperm.xlu0 %2318, %v2554_v31  }
  0x66   :  { %2298 = vset.pattern.permute.xlu1 %v2334_v6 }
  0x67   :  { %368 = vperm.xlu1 %2298, %v2402_v9  }
  0x68   :  { %865 = vperm.xlu0 %2318, %v2561_v32  }
  0x6b   :  { %2299 = vset.pattern.permute.xlu1 %v2335_v22 }
  0x6c   :  { %799 = vperm.xlu1 %2299, %v2407_v10   ;;  %2323 = vset.pattern.permute.xlu0 %v2336_v33 }
  0x6d   :  { %1138 = vperm.xlu0 %2323, %v2363_v2  }
  0x70   :  { %2300 = vset.pattern.permute.xlu1 %v2334_v6 }
  0x71   :  { %371 = vperm.xlu1 %2300, %v2507_v26   ;;  %1147 = vperm.xlu0 %2323, %v2370_v3   ;;  %v2679_v3 = vadd.s32 4294967168, %v2655_v58 }
  0x75   :  { %374 = vperm.xlu1 %2300, %v2414_v11   ;;  %1153 = vperm.xlu0 %2323, %v2382_v5   ;;  %v2337_v5 = vmov 1.0|1.0  }
  0x79   :  { %2301 = vset.pattern.permute.xlu1 %v2335_v22  ;;  %1159 = vperm.xlu0 %2323, %v2390_v7  }
  0x7a   :  { %808 = vperm.xlu1 %2301, %v2414_v11  }
  0x7d   :  { %1165 = vperm.xlu0 %2323, %v2402_v9  }
  0x7e   :  { %2302 = vset.pattern.permute.xlu1 %v2334_v6 }
  0x7f   :  { %380 = vperm.xlu1 %2302, %v2426_v13  }
  0x81   :  { %v2581_v34 = vpop.permute.xlu1 %57  ;;  %1171 = vperm.xlu0 %2323, %v2414_v11   ;;  %v2584_v35 = vpop.permute.xlu0 %51 }
  0x83   :  { %2303 = vset.pattern.permute.xlu1 %v2335_v22 }
  0x84   :  { %811 = vperm.xlu1 %2303, %v2419_v12  }
  0x85   :  { %v2588_v36 = vpop.permute.xlu1 %60  ;;  %1177 = vperm.xlu0 %2323, %v2426_v13   ;;  %v2591_v37 = vpop.permute.xlu0 %54 }
  0x88   :  { %2304 = vset.pattern.permute.xlu1 %v2334_v6 }
  0x89   :  { %v2594_v38 = vpop.permute.xlu1 %66  ;;  %383 = vperm.xlu1 %2304, %v2517_v27   ;;  %1183 = vperm.xlu0 %2323, %v2438_v15  }
  0x8a   :  { %v2598_v39 = vpop.permute.xlu0 %341 }
  0x8b   :  { %vm437_vm0 = vcmp.eq.s32.totalorder %v2598_v39, %v2664_v61  ;;  %vm436_vm1 = vcmp.eq.s32.totalorder %v2598_v39, %v2655_v58 }
  0x8d   :  { %v2600_v40 = vpop.permute.xlu1 %72  ;;  %386 = vperm.xlu1 %2304, %v2438_v15   ;;  %1189 = vperm.xlu0 %2323, %v2450_v17  }
  0x8e   :  { %v2604_v41 = vpop.permute.xlu0 %353 }
  0x91   :  { %v2606_v42 = vpop.permute.xlu1 %78  ;;  %2305 = vset.pattern.permute.xlu1 %v2335_v22  ;;  %1195 = vperm.xlu0 %2323, %v2462_v19  }
  0x92   :  { %820 = vperm.xlu1 %2305, %v2438_v15   ;;  %v2611_v43 = vpop.permute.xlu0 %365 }
  0x95   :  { %v2613_v44 = vpop.permute.xlu1 %84  ;;  %1201 = vperm.xlu0 %2323, %v2474_v21  }
  0x96   :  { %2306 = vset.pattern.permute.xlu1 %v2334_v6  ;;  %v2617_v45 = vpop.permute.xlu0 %377 }
  0x97   :  { %392 = vperm.xlu1 %2306, %v2450_v17  }
  0x99   :  { %v2620_v46 = vpop.permute.xlu1 %90  ;;  %1207 = vperm.xlu0 %2323, %v2481_v23  }
  0x9a   :  { %v2623_v47 = vpop.permute.xlu0 %389 }
  0x9b   :  { %2307 = vset.pattern.permute.xlu1 %v2335_v22 }
  0x9c   :  { %823 = vperm.xlu1 %2307, %v2431_v14  }
  0x9d   :  { %v2627_v48 = vpop.permute.xlu1 %96  ;;  %1213 = vperm.xlu0 %2323, %v2488_v24  }
  0x9e   :  { %v2630_v49 = vpop.permute.xlu0 %401 }
  0xa0   :  { %2308 = vset.pattern.permute.xlu1 %v2334_v6 }
  0xa1   :  { %v2633_v50 = vpop.permute.xlu1 %102  ;;  %395 = vperm.xlu1 %2308, %v2526_v28   ;;  %1222 = vperm.xlu0 %2323, %v2467_v20  }
  0xa2   :  { %v2637_v51 = vpop.permute.xlu0 %413 }
  0xa5   :  { %v2639_v52 = vpop.permute.xlu1 %108  ;;  %398 = vperm.xlu1 %2308, %v2462_v19   ;;  %2328 = vset.pattern.permute.xlu0 %v2333_v0 }
  0xa6   :  { %63 = vperm.xlu0 %2328, %v2395_v8   ;;  %v2644_v53 = vpop.permute.xlu0 %425 }
  0xa9   :  { %v2646_v54 = vpop.permute.xlu1 %114  ;;  %2309 = vset.pattern.permute.xlu1 %v2335_v22 }
  0xaa   :  { %832 = vperm.xlu1 %2309, %v2462_v19   ;;  %69 = vperm.xlu0 %2328, %v2496_v25  }
  0xab   :  { %v779_v56 = vpop.permute.xlu0 %778 }
  0xac   :  { %vm873_vm6 = vcmp.eq.s32.totalorder %v779_v56, %v2673_v63  ;;  %vm872_vm7 = vcmp.eq.s32.totalorder %v779_v56, %v2679_v3 }
  0xad   :  { %v2651_v57 = vpop.permute.xlu1 %120 }
  0xae   :  { %2310 = vset.pattern.permute.xlu1 %v2334_v6  ;;  %75 = vperm.xlu0 %2328, %v2407_v10  }
  0xaf   :  { %404 = vperm.xlu1 %2310, %v2474_v21   ;;  %v2658_v59 = vpop.permute.xlu0 %781 }
  0xb1   :  { %v2660_v60 = vpop.permute.xlu1 %126 }
  0xb2   :  { %81 = vperm.xlu0 %2328, %v2507_v26  }
  0xb3   :  { %2311 = vset.pattern.permute.xlu1 %v2335_v22  ;;  %v2668_v62 = vpop.permute.xlu0 %790 }
  0xb4   :  { %835 = vperm.xlu1 %2311, %v2443_v16  }
  0xb6   :  { %v345_v2 = vpop.permute.xlu1 %344  ;;  %87 = vperm.xlu0 %2328, %v2419_v12  }
  0xb7   :  { %vm439_vm2 = vcmp.eq.s32.totalorder %v345_v2, %v2664_v61  ;;  %vm438_vm3 = vcmp.eq.s32.totalorder %v345_v2, %v2655_v58  ;;  %v2690_v7 = vpop.permute.xlu0 %793 }
  0xb8   :  { %2312 = vset.pattern.permute.xlu1 %v2334_v6  ;;  %vm2020_vm4 = vmpackc.low %vm439_vm2, %vm437_vm0  ;;  %vm875_vm2 = vcmp.eq.s32.totalorder %v2658_v59, %v2673_v63 }
  0xb9   :  { %407 = vperm.xlu1 %2312, %v2537_v29   ;;  %2021 = vmatprep.subr.msk.bf16.mxu1 %vm2020_vm4, %v2337_v5  ;;  %vm2022_vm5 = vmpackc.low %vm438_vm3, %vm436_vm1  ;;  %vm874_vm3 = vcmp.eq.s32.totalorder %v2658_v59, %v2679_v3  ;;  %v2762_v59 = vld [vmem:[%s3364_s0 + $0xf8] sm:$0xff] }
  0xba   :  { %93 = vperm.xlu0 %2328, %v2517_v27   ;;  %2023 = vmatpush1.bf16.msk.msra.mxu1 %vm2022_vm5, %v2337_v5 }
  0xbb   :  { %v776_v9 = vpop.permute.xlu1 %775  ;;  %v2698_v13 = vpop.permute.xlu0 %802 }
  0xbc   :  { %vm871_vm8 = vcmp.eq.s32.totalorder %v776_v9, %v2673_v63  ;;  %vm870_vm9 = vcmp.eq.s32.totalorder %v776_v9, %v2679_v3 }
  0xbd   :  { %410 = vperm.xlu1 %2312, %v2481_v23   ;;  %vm2148_vm10 = vmpackc.low %vm873_vm6, %vm871_vm8  ;;  %vm445_vm8 = vcmp.eq.s32.totalorder %v2604_v41, %v2664_v61 }
  0xbe   :  { %99 = vperm.xlu0 %2328, %v2431_v14   ;;  %2149 = vmatprep.subr.msk.bf16.mxu0 %vm2148_vm10, %v2337_v5  ;;  %vm2150_vm11 = vmpackc.low %vm872_vm7, %vm870_vm9  ;;  %vm444_vm9 = vcmp.eq.s32.totalorder %v2604_v41, %v2655_v58 }
  0xbf   :  { %2151 = vmatpush1.bf16.msk.msra.mxu0 %vm2150_vm11, %v2337_v5  ;;  %v2709_v17 = vpop.permute.xlu0 %805 }
  0xc0   :  { %v348_v11 = vpop.permute.xlu1 %347 }
  0xc1   :  { %2313 = vset.pattern.permute.xlu1 %v2335_v22  ;;  %vm441_vm12 = vcmp.eq.s32.totalorder %v348_v11, %v2664_v61  ;;  %vm440_vm15 = vcmp.eq.s32.totalorder %v348_v11, %v2655_v58 }
  0xc2   :  { %844 = vperm.xlu1 %2313, %v2481_v23   ;;  %105 = vperm.xlu0 %2328, %v2526_v28  }
  0xc3   :  { %v2726_v21 = vpop.permute.xlu0 %814 }
  0xc4   :  { %v351_v15 = vpop.permute.xlu1 %350 }
  0xc5   :  { %vm442_vm13 = vcmp.eq.s32.totalorder %v351_v15, %v2655_v58  ;;  %vm443_vm14 = vcmp.eq.s32.totalorder %v351_v15, %v2664_v61 }
  0xc6   :  { %2314 = vset.pattern.permute.xlu1 %v2334_v6  ;;  %111 = vperm.xlu0 %2328, %v2443_v16   ;;  %vm2024_vm0 = vmpackc.low %vm443_vm14, %vm441_vm12  ;;  %vm881_vm14 = vcmp.eq.s32.totalorder %v2668_v62, %v2673_v63 }
  0xc7   :  { %416 = vperm.xlu1 %2314, %v2488_v24   ;;  %2025 = vmatprep.subr.msk.bf16.mxu1 %vm2024_vm0, %v2337_v5  ;;  %vm2026_vm1 = vmpackc.low %vm442_vm13, %vm440_vm15  ;;  %v2740_v24 = vld [vmem:[%s3364_s0 + $0xd8] sm:$0xff]  ;;  %vm880_vm15 = vcmp.eq.s32.totalorder %v2668_v62, %v2679_v3  ;;  %v2748_v39 = vpop.permute.xlu0 %817 }
  0xc8   :  { %2027 = vmatpush1.bf16.msk.msra.mxu1 %vm2026_vm1, %v2337_v5 }
  0xc9   :  { %v785_v19 = vpop.permute.xlu1 %784 }
  0xca   :  { %vm876_vm4 = vcmp.eq.s32.totalorder %v785_v19, %v2679_v3  ;;  %vm877_vm5 = vcmp.eq.s32.totalorder %v785_v19, %v2673_v63  ;;  %117 = vperm.xlu0 %2328, %v2537_v29   ;;  %v629_v19 = vld [vmem:[%s3365_s1 + $0x18] sm:$0xff] }
  0xcb   :  { %2315 = vset.pattern.permute.xlu1 %v2335_v22  ;;  %vm2152_vm6 = vmpackc.low %vm877_vm5, %vm875_vm2  ;;  %v2756_v56 = vpop.permute.xlu0 %826  ;;  %694 = vmatprep.mubr.f32.mxu1 %v629_v19 }
  0xcc   :  { %847 = vperm.xlu1 %2315, %v2455_v18   ;;  %2153 = vmatprep.subr.msk.bf16.mxu0 %vm2152_vm6, %v2337_v5  ;;  %vm2154_vm7 = vmpackc.low %vm876_vm4, %vm874_vm3 }
  0xcd   :  { %2155 = vmatpush1.bf16.msk.msra.mxu0 %vm2154_vm7, %v2337_v5 }
  0xce   :  { %v357_v23 = vpop.permute.xlu1 %356  ;;  %123 = vperm.xlu0 %2328, %v2455_v18  }
  0xcf   :  { %vm446_vm10 = vcmp.eq.s32.totalorder %v357_v23, %v2655_v58  ;;  %vm447_vm11 = vcmp.eq.s32.totalorder %v357_v23, %v2664_v61  ;;  %v2772_v2 = vpop.permute.xlu0 %829 }
  0xd0   :  { %2316 = vset.pattern.permute.xlu1 %v2334_v6  ;;  %vm2028_vm12 = vmpackc.low %vm447_vm11, %vm445_vm8  ;;  %vm882_vm11 = vcmp.eq.s32.totalorder %v2690_v7, %v2679_v3 }
  0xd1   :  { %419 = vperm.xlu1 %2316, %v2547_v30   ;;  %2029 = vmatprep.subr.msk.bf16.mxu1 %vm2028_vm12, %v2337_v5  ;;  %vm2030_vm13 = vmpackc.low %vm446_vm10, %vm444_vm9  ;;  %vm883_vm10 = vcmp.eq.s32.totalorder %v2690_v7, %v2673_v63 }
  0xd2   :  { %2031 = vmatpush1.bf16.msk.msra.mxu1 %vm2030_vm13, %v2337_v5  ;;  %132 = vperm.xlu0 %2328, %v2740_v24  }
  0xd3   :  { %v788_v41 = vpop.permute.xlu1 %787  ;;  %v2788_v11 = vpop.permute.xlu0 %838 }
  0xd4   :  { %vm878_vm0 = vcmp.eq.s32.totalorder %v788_v41, %v2679_v3  ;;  %vm879_vm1 = vcmp.eq.s32.totalorder %v788_v41, %v2673_v63  ;;  %v1063_v41 = vld [vmem:[%s3365_s1 + $0x28] sm:$0xff] }
  0xd5   :  { %422 = vperm.xlu1 %2316, %v2740_v24   ;;  %vm2156_vm2 = vmpackc.low %vm881_vm14, %vm879_vm1  ;;  %vm452_vm1 = vcmp.eq.s32.totalorder %v2611_v43, %v2655_v58  ;;  %1128 = vmatprep.mubr.f32.mxu0 %v1063_v41 }
  0xd6   :  { %2157 = vmatprep.subr.msk.bf16.mxu0 %vm2156_vm2, %v2337_v5  ;;  %vm2158_vm3 = vmpackc.low %vm880_vm15, %vm878_vm0  ;;  %135 = vperm.xlu0 %2328, %v2467_v20   ;;  %vm453_vm0 = vcmp.eq.s32.totalorder %v2611_v43, %v2664_v61 }
  0xd7   :  { %2159 = vmatpush1.bf16.msk.msra.mxu0 %vm2158_vm3, %v2337_v5 }
  0xd8   :  { %v360_v55 = vpop.permute.xlu1 %359 }
  0xd9   :  { %2317 = vset.pattern.permute.xlu1 %v2335_v22  ;;  %vm449_vm4 = vcmp.eq.s32.totalorder %v360_v55, %v2664_v61  ;;  %vm448_vm7 = vcmp.eq.s32.totalorder %v360_v55, %v2655_v58 }
  0xda   :  { %856 = vperm.xlu1 %2317, %v2740_v24   ;;  %144 = vperm.xlu0 %2328, %v2762_v59  }
  0xdc   :  { %v363_v62 = vpop.permute.xlu1 %362 }
  0xdd   :  { %vm450_vm5 = vcmp.eq.s32.totalorder %v363_v62, %v2655_v58  ;;  %vm451_vm6 = vcmp.eq.s32.totalorder %v363_v62, %v2664_v61 }
  0xde   :  { %2319 = vset.pattern.permute.xlu1 %v2334_v6  ;;  %vm2032_vm8 = vmpackc.low %vm451_vm6, %vm449_vm4  ;;  %2332 = vset.pattern.permute.xlu0 %v2336_v33  ;;  %vm889_vm6 = vcmp.eq.s32.totalorder %v2698_v13, %v2673_v63 }
  0xdf   :  { %428 = vperm.xlu1 %2319, %v2554_v31   ;;  %2033 = vmatprep.subr.msk.bf16.mxu1 %vm2032_vm8, %v2337_v5  ;;  %vm2034_vm9 = vmpackc.low %vm450_vm5, %vm448_vm7  ;;  %vm888_vm7 = vcmp.eq.s32.totalorder %v2698_v13, %v2679_v3 }
  0xe0   :  { %2035 = vmatpush1.bf16.msk.msra.mxu1 %vm2034_vm9, %v2337_v5 }
  0xe1   :  { %v797_v9 = vpop.permute.xlu1 %796 }
  0xe2   :  { %vm884_vm12 = vcmp.eq.s32.totalorder %v797_v9, %v2679_v3  ;;  %vm885_vm13 = vcmp.eq.s32.totalorder %v797_v9, %v2673_v63 }
  0xe3   :  { %2320 = vset.pattern.permute.xlu1 %v2335_v22  ;;  %vm2160_vm14 = vmpackc.low %vm885_vm13, %vm883_vm10 }
  0xe4   :  { %859 = vperm.xlu1 %2320, %v2467_v20   ;;  %2161 = vmatprep.subr.msk.bf16.mxu0 %vm2160_vm14, %v2337_v5  ;;  %vm2162_vm15 = vmpackc.low %vm884_vm12, %vm882_vm11  ;;  %v2803_v20 = vpop.permute.xlu0 %841 }
  0xe5   :  { %2163 = vmatpush1.bf16.msk.msra.mxu0 %vm2162_vm15, %v2337_v5 }
  0xe6   :  { %v369_v7 = vpop.permute.xlu1 %368 }
  0xe7   :  { %vm454_vm2 = vcmp.eq.s32.totalorder %v369_v7, %v2655_v58  ;;  %vm455_vm3 = vcmp.eq.s32.totalorder %v369_v7, %v2664_v61 }
  0xe8   :  { %2321 = vset.pattern.permute.xlu1 %v2334_v6  ;;  %vm2036_vm4 = vmpackc.low %vm455_vm3, %vm453_vm0  ;;  %v2810_v15 = vpop.permute.xlu0 %850  ;;  %vm890_vm3 = vcmp.eq.s32.totalorder %v2709_v17, %v2679_v3 }
  0xe9   :  { %431 = vperm.xlu1 %2321, %v2561_v32   ;;  %2037 = vmatprep.subr.msk.bf16.mxu1 %vm2036_vm4, %v2337_v5  ;;  %vm2038_vm5 = vmpackc.low %vm454_vm2, %vm452_vm1  ;;  %vm891_vm2 = vcmp.eq.s32.totalorder %v2709_v17, %v2673_v63 }
  0xea   :  { %2039 = vmatpush1.bf16.msk.msra.mxu1 %vm2038_vm5, %v2337_v5 }
  0xeb   :  { %v800_v43 = vpop.permute.xlu1 %799 }
  0xec   :  { %vm886_vm8 = vcmp.eq.s32.totalorder %v800_v43, %v2679_v3  ;;  %vm887_vm9 = vcmp.eq.s32.totalorder %v800_v43, %v2673_v63 }
  0xed   :  { %434 = vperm.xlu1 %2321, %v2762_v59   ;;  %vm2164_vm10 = vmpackc.low %vm889_vm6, %vm887_vm9  ;;  %vm460_vm9 = vcmp.eq.s32.totalorder %v2617_v45, %v2655_v58 }
  0xee   :  { %2165 = vmatprep.subr.msk.bf16.mxu0 %vm2164_vm10, %v2337_v5  ;;  %vm2166_vm11 = vmpackc.low %vm888_vm7, %vm886_vm8  ;;  %vm461_vm8 = vcmp.eq.s32.totalorder %v2617_v45, %v2664_v61 }
  0xef   :  { %2167 = vmatpush1.bf16.msk.msra.mxu0 %vm2166_vm11, %v2337_v5 }
  0xf0   :  { %v372_v6 = vpop.permute.xlu1 %371 }
  0xf1   :  { %2322 = vset.pattern.permute.xlu1 %v2335_v22  ;;  %vm457_vm12 = vcmp.eq.s32.totalorder %v372_v6, %v2664_v61  ;;  %vm456_vm15 = vcmp.eq.s32.totalorder %v372_v6, %v2655_v58  ;;  %v2822_v22 = vpop.permute.xlu0 %853 }
  0xf2   :  { %868 = vperm.xlu1 %2322, %v2762_v59  }
  0xf4   :  { %v375_v13 = vpop.permute.xlu1 %374 }
  0xf5   :  { %vm458_vm13 = vcmp.eq.s32.totalorder %v375_v13, %v2655_v58  ;;  %vm459_vm14 = vcmp.eq.s32.totalorder %v375_v13, %v2664_v61 }
  0xf6   :  { %vm2040_vm0 = vmpackc.low %vm459_vm14, %vm457_vm12  ;;  %2324 = vset.pattern.permute.xlu1 %v2336_v33  ;;  %vm897_vm14 = vcmp.eq.s32.totalorder %v2726_v21, %v2673_v63 }
  0xf7   :  { %vm2042_vm1 = vmpackc.low %vm458_vm13, %vm456_vm15  ;;  %1141 = vperm.xlu1 %2324, %v2375_v4   ;;  %2041 = vmatprep.subr.msk.bf16.mxu1 %vm2040_vm0, %v2337_v5  ;;  %v2840_v4 = vpop.permute.xlu0 %862  ;;  %vm896_vm15 = vcmp.eq.s32.totalorder %v2726_v21, %v2679_v3 }
  0xf8   :  { %2043 = vmatpush1.bf16.msk.msra.mxu1 %vm2042_vm1, %v2337_v5 }
  0xf9   :  { %v809_v23 = vpop.permute.xlu1 %808 }
  0xfa   :  { %vm892_vm4 = vcmp.eq.s32.totalorder %v809_v23, %v2679_v3  ;;  %vm893_vm5 = vcmp.eq.s32.totalorder %v809_v23, %v2673_v63 }
  0xfb   :  { %vm2168_vm6 = vmpackc.low %vm893_vm5, %vm891_vm2  ;;  %1144 = vperm.xlu1 %2324, %v2358_v1   ;;  %v2854_v1 = vpop.permute.xlu0 %865 }
  0xfc   :  { %vm2170_vm7 = vmpackc.low %vm892_vm4, %vm890_vm3  ;;  %2169 = vmatprep.subr.msk.bf16.mxu0 %vm2168_vm6, %v2337_v5 }
  0xfd   :  { %2171 = vmatpush1.bf16.msk.msra.mxu0 %vm2170_vm7, %v2337_v5 }
  0xfe   :  { %v381_v17 = vpop.permute.xlu1 %380 }
  0xff   :  { %vm462_vm10 = vcmp.eq.s32.totalorder %v381_v17, %v2655_v58  ;;  %vm463_vm11 = vcmp.eq.s32.totalorder %v381_v17, %v2664_v61  ;;  %1150 = vperm.xlu1 %2324, %v2395_v8   ;;  %v2862_v55 = vpop.permute.xlu0 %1138  ;;  %v1062_v17 = vld [vmem:[%s3365_s1 + $0x20] sm:$0xff] }
 0x100   :  { %vm2044_vm12 = vmpackc.low %vm463_vm11, %vm461_vm8  ;;  %vm898_vm11 = vcmp.eq.s32.totalorder %v2748_v39, %v2679_v3 }
 0x101   :  { %vm2046_vm13 = vmpackc.low %vm462_vm10, %vm460_vm9  ;;  %2045 = vmatprep.subr.msk.bf16.mxu1 %vm2044_vm12, %v2337_v5  ;;  %vm899_vm10 = vcmp.eq.s32.totalorder %v2748_v39, %v2673_v63 }
 0x102   :  { %2047 = vmatpush1.bf16.msk.msra.mxu1 %vm2046_vm13, %v2337_v5 }
 0x103   :  { %1156 = vperm.xlu1 %2324, %v2496_v25   ;;  %v812_v45 = vpop.permute.xlu1 %811  ;;  %v2869_v25 = vpop.permute.xlu0 %1147 }
 0x104   :  { %vm894_vm0 = vcmp.eq.s32.totalorder %v812_v45, %v2679_v3  ;;  %vm895_vm1 = vcmp.eq.s32.totalorder %v812_v45, %v2673_v63 }
 0x105   :  { %vm2172_vm2 = vmpackc.low %vm897_vm14, %vm895_vm1 }
 0x106   :  { %vm2174_vm3 = vmpackc.low %vm896_vm15, %vm894_vm0  ;;  %2173 = vmatprep.subr.msk.bf16.mxu0 %vm2172_vm2, %v2337_v5  ;;  %vm469_vm0 = vcmp.eq.s32.totalorder %v2623_v47, %v2664_v61 }
 0x107   :  { %1162 = vperm.xlu1 %2324, %v2407_v10   ;;  %2175 = vmatpush1.bf16.msk.msra.mxu0 %vm2174_vm3, %v2337_v5  ;;  %vm468_vm3 = vcmp.eq.s32.totalorder %v2623_v47, %v2655_v58 }
 0x108   :  { %v384_v8 = vpop.permute.xlu1 %383 }
 0x109   :  { %vm465_vm4 = vcmp.eq.s32.totalorder %v384_v8, %v2664_v61  ;;  %vm464_vm7 = vcmp.eq.s32.totalorder %v384_v8, %v2655_v58 }
 0x10b   :  { %1168 = vperm.xlu1 %2324, %v2507_v26  }
 0x10c   :  { %v387_v21 = vpop.permute.xlu1 %386 }
 0x10d   :  { %vm466_vm5 = vcmp.eq.s32.totalorder %v387_v21, %v2655_v58  ;;  %vm467_vm6 = vcmp.eq.s32.totalorder %v387_v21, %v2664_v61 }
 0x10e   :  { %vm2048_vm8 = vmpackc.low %vm467_vm6, %vm465_vm4  ;;  %vm905_vm6 = vcmp.eq.s32.totalorder %v2756_v56, %v2673_v63 }
 0x10f   :  { %vm2050_vm9 = vmpackc.low %vm466_vm5, %vm464_vm7  ;;  %1174 = vperm.xlu1 %2324, %v2419_v12   ;;  %2049 = vmatprep.subr.msk.bf16.mxu1 %vm2048_vm8, %v2337_v5  ;;  %v2882_v12 = vpop.permute.xlu0 %1153  ;;  %vm904_vm7 = vcmp.eq.s32.totalorder %v2756_v56, %v2679_v3 }
 0x110   :  { %2051 = vmatpush1.bf16.msk.msra.mxu1 %vm2050_vm9, %v2337_v5 }
 0x111   :  { %v821_v10 = vpop.permute.xlu1 %820 }
 0x112   :  { %vm900_vm12 = vcmp.eq.s32.totalorder %v821_v10, %v2679_v3  ;;  %vm901_vm13 = vcmp.eq.s32.totalorder %v821_v10, %v2673_v63 }
 0x113   :  { %vm2176_vm14 = vmpackc.low %vm901_vm13, %vm899_vm10  ;;  %1180 = vperm.xlu1 %2324, %v2517_v27   ;;  %v2898_v27 = vpop.permute.xlu0 %1159 }
 0x114   :  { %vm2178_vm15 = vmpackc.low %vm900_vm12, %vm898_vm11  ;;  %2177 = vmatprep.subr.msk.bf16.mxu0 %vm2176_vm14, %v2337_v5 }
 0x115   :  { %2179 = vmatpush1.bf16.msk.msra.mxu0 %vm2178_vm15, %v2337_v5 }
 0x116   :  { %v393_v26 = vpop.permute.xlu1 %392 }
 0x117   :  { %vm470_vm1 = vcmp.eq.s32.totalorder %v393_v26, %v2655_v58  ;;  %vm471_vm2 = vcmp.eq.s32.totalorder %v393_v26, %v2664_v61  ;;  %1186 = vperm.xlu1 %2324, %v2431_v14   ;;  %v2906_v39 = vpop.permute.xlu0 %1165 }
 0x118   :  { %vm2052_vm4 = vmpackc.low %vm471_vm2, %vm469_vm0  ;;  %vm907_vm2 = vcmp.eq.s32.totalorder %v2772_v2, %v2673_v63 }
 0x119   :  { %vm2054_vm5 = vmpackc.low %vm470_vm1, %vm468_vm3  ;;  %2053 = vmatprep.subr.msk.bf16.mxu1 %vm2052_vm4, %v2337_v5 }
 0x11a   :  { %2055 = vmatpush1.bf16.msk.msra.mxu1 %vm2054_vm5, %v2337_v5  ;;  %vm906_vm5 = vcmp.eq.s32.totalorder %v2772_v2, %v2679_v3 }
 0x11b   :  { %1192 = vperm.xlu1 %2324, %v2526_v28   ;;  %v824_v14 = vpop.permute.xlu1 %823  ;;  %v2913_v28 = vpop.permute.xlu0 %1171 }
 0x11c   :  { %vm902_vm8 = vcmp.eq.s32.totalorder %v824_v14, %v2679_v3  ;;  %vm903_vm9 = vcmp.eq.s32.totalorder %v824_v14, %v2673_v63 }
 0x11d   :  { %vm2180_vm10 = vmpackc.low %vm905_vm6, %vm903_vm9 }
 0x11e   :  { %vm2182_vm11 = vmpackc.low %vm904_vm7, %vm902_vm8  ;;  %2181 = vmatprep.subr.msk.bf16.mxu0 %vm2180_vm10, %v2337_v5  ;;  %vm477_vm10 = vcmp.eq.s32.totalorder %v2630_v49, %v2664_v61 }
 0x11f   :  { %1198 = vperm.xlu1 %2324, %v2443_v16   ;;  %2183 = vmatpush1.bf16.msk.msra.mxu0 %vm2182_vm11, %v2337_v5  ;;  %vm476_vm11 = vcmp.eq.s32.totalorder %v2630_v49, %v2655_v58 }
 0x120   :  { %v396_v47 = vpop.permute.xlu1 %395 }
 0x121   :  { %vm473_vm12 = vcmp.eq.s32.totalorder %v396_v47, %v2664_v61  ;;  %vm472_vm15 = vcmp.eq.s32.totalorder %v396_v47, %v2655_v58 }
 0x123   :  { %1204 = vperm.xlu1 %2324, %v2537_v29  }
 0x124   :  { %v399_v56 = vpop.permute.xlu1 %398 }
 0x125   :  { %vm474_vm13 = vcmp.eq.s32.totalorder %v399_v56, %v2655_v58  ;;  %vm475_vm14 = vcmp.eq.s32.totalorder %v399_v56, %v2664_v61 }
 0x126   :  { %vm2056_vm0 = vmpackc.low %vm475_vm14, %vm473_vm12  ;;  %vm913_vm14 = vcmp.eq.s32.totalorder %v2788_v11, %v2673_v63 }
 0x127   :  { %vm2058_vm1 = vmpackc.low %vm474_vm13, %vm472_vm15  ;;  %1210 = vperm.xlu1 %2324, %v2455_v18   ;;  %2057 = vmatprep.subr.msk.bf16.mxu1 %vm2056_vm0, %v2337_v5  ;;  %v2927_v18 = vpop.permute.xlu0 %1177 }
 0x128   :  { %2059 = vmatpush1.bf16.msk.msra.mxu1 %vm2058_vm1, %v2337_v5  ;;  %vm912_vm1 = vcmp.eq.s32.totalorder %v2788_v11, %v2679_v3 }
 0x129   :  { %v833_v16 = vpop.permute.xlu1 %832 }
 0x12a   :  { %vm908_vm3 = vcmp.eq.s32.totalorder %v833_v16, %v2679_v3  ;;  %vm909_vm4 = vcmp.eq.s32.totalorder %v833_v16, %v2673_v63 }
 0x12b   :  { %vm2184_vm6 = vmpackc.low %vm909_vm4, %vm907_vm2  ;;  %2325 = vset.pattern.permute.xlu1 %v2333_v0  ;;  %v2939_v62 = vpop.permute.xlu0 %1183 }
 0x12c   :  { %vm2186_vm7 = vmpackc.low %vm908_vm3, %vm906_vm5  ;;  %129 = vperm.xlu1 %2325, %v2547_v30   ;;  %2185 = vmatprep.subr.msk.bf16.mxu0 %vm2184_vm6, %v2337_v5 }
 0x12d   :  { %2187 = vmatpush1.bf16.msk.msra.mxu0 %vm2186_vm7, %v2337_v5 }
 0x12e   :  { %v405_v29 = vpop.permute.xlu1 %404 }
 0x12f   :  { %vm478_vm8 = vcmp.eq.s32.totalorder %v405_v29, %v2655_v58  ;;  %vm479_vm9 = vcmp.eq.s32.totalorder %v405_v29, %v2664_v61  ;;  %v2951_v49 = vpop.permute.xlu0 %1189  ;;  %v338_v29 = vld [vmem:[%s3365_s1] sm:$0xff] }
 0x130   :  { %2326 = vset.pattern.permute.xlu1 %v2336_v33  ;;  %vm2060_vm12 = vmpackc.low %vm479_vm9, %vm477_vm10  ;;  %vm915_vm10 = vcmp.eq.s32.totalorder %v2803_v20, %v2673_v63 }
 0x131   :  { %1216 = vperm.xlu1 %2326, %v2547_v30   ;;  %vm2062_vm13 = vmpackc.low %vm478_vm8, %vm476_vm11  ;;  %2061 = vmatprep.subr.msk.bf16.mxu1 %vm2060_vm12, %v2337_v5 }
 0x132   :  { %2063 = vmatpush1.bf16.msk.msra.mxu1 %vm2062_vm13, %v2337_v5  ;;  %vm914_vm13 = vcmp.eq.s32.totalorder %v2803_v20, %v2679_v3 }
 0x133   :  { %v836_v2 = vpop.permute.xlu1 %835 }
 0x134   :  { %vm910_vm15 = vcmp.eq.s32.totalorder %v836_v2, %v2679_v3  ;;  %vm911_vm0 = vcmp.eq.s32.totalorder %v836_v2, %v2673_v63 }
 0x135   :  { %vm2188_vm2 = vmpackc.low %vm913_vm14, %vm911_vm0  ;;  %1219 = vperm.xlu1 %2326, %v2740_v24   ;;  %v2960_v24 = vpop.permute.xlu0 %1195 }
 0x136   :  { %vm2190_vm3 = vmpackc.low %vm912_vm1, %vm910_vm15  ;;  %2189 = vmatprep.subr.msk.bf16.mxu0 %vm2188_vm2, %v2337_v5  ;;  %vm485_vm2 = vcmp.eq.s32.totalorder %v2637_v51, %v2664_v61 }
 0x137   :  { %2191 = vmatpush1.bf16.msk.msra.mxu0 %vm2190_vm3, %v2337_v5  ;;  %vm484_vm3 = vcmp.eq.s32.totalorder %v2637_v51, %v2655_v58 }
 0x138   :  { %v408_v30 = vpop.permute.xlu1 %407 }
 0x139   :  { %2327 = vset.pattern.permute.xlu1 %v2333_v0  ;;  %vm481_vm4 = vcmp.eq.s32.totalorder %v408_v30, %v2664_v61  ;;  %vm480_vm7 = vcmp.eq.s32.totalorder %v408_v30, %v2655_v58 }
 0x13a   :  { %138 = vperm.xlu1 %2327, %v2554_v31  }
 0x13c   :  { %v411_v9 = vpop.permute.xlu1 %410 }
 0x13d   :  { %vm482_vm5 = vcmp.eq.s32.totalorder %v411_v9, %v2655_v58  ;;  %vm483_vm6 = vcmp.eq.s32.totalorder %v411_v9, %v2664_v61 }
 0x13e   :  { %vm2064_vm8 = vmpackc.low %vm483_vm6, %vm481_vm4  ;;  %2329 = vset.pattern.permute.xlu1 %v2336_v33  ;;  %vm921_vm6 = vcmp.eq.s32.totalorder %v2810_v15, %v2673_v63 }
 0x13f   :  { %vm2066_vm9 = vmpackc.low %vm482_vm5, %vm480_vm7  ;;  %1225 = vperm.xlu1 %2329, %v2554_v31   ;;  %2065 = vmatprep.subr.msk.bf16.mxu1 %vm2064_vm8, %v2337_v5  ;;  %v2974_v31 = vpop.permute.xlu0 %1201 }
 0x140   :  { %2067 = vmatpush1.bf16.msk.msra.mxu1 %vm2066_vm9, %v2337_v5  ;;  %vm920_vm9 = vcmp.eq.s32.totalorder %v2810_v15, %v2679_v3 }
 0x141   :  { %v845_v11 = vpop.permute.xlu1 %844 }
 0x142   :  { %vm916_vm11 = vcmp.eq.s32.totalorder %v845_v11, %v2679_v3  ;;  %vm917_vm12 = vcmp.eq.s32.totalorder %v845_v11, %v2673_v63 }
 0x143   :  { %vm2192_vm14 = vmpackc.low %vm917_vm12, %vm915_vm10  ;;  %2330 = vset.pattern.permute.xlu1 %v2333_v0  ;;  %v2986_v0 = vpop.permute.xlu0 %1207 }
 0x144   :  { %vm2194_vm15 = vmpackc.low %vm916_vm11, %vm914_vm13  ;;  %141 = vperm.xlu1 %2330, %v2561_v32   ;;  %2193 = vmatprep.subr.msk.bf16.mxu0 %vm2192_vm14, %v2337_v5 }
 0x145   :  { %2195 = vmatpush1.bf16.msk.msra.mxu0 %vm2194_vm15, %v2337_v5 }
 0x146   :  { %v417_v7 = vpop.permute.xlu1 %416 }
 0x147   :  { %vm486_vm0 = vcmp.eq.s32.totalorder %v417_v7, %v2655_v58  ;;  %vm487_vm1 = vcmp.eq.s32.totalorder %v417_v7, %v2664_v61 }
 0x148   :  { %2331 = vset.pattern.permute.xlu1 %v2336_v33  ;;  %vm2068_vm4 = vmpackc.low %vm487_vm1, %vm485_vm2  ;;  %v2998_v33 = vpop.permute.xlu0 %1213  ;;  %vm923_vm2 = vcmp.eq.s32.totalorder %v2822_v22, %v2673_v63 }
 0x149   :  { %1228 = vperm.xlu1 %2331, %v2561_v32   ;;  %vm2070_vm5 = vmpackc.low %vm486_vm0, %vm484_vm3  ;;  %2069 = vmatprep.subr.msk.bf16.mxu1 %vm2068_vm4, %v2337_v5 }
 0x14a   :  { %2071 = vmatpush1.bf16.msk.msra.mxu1 %vm2070_vm5, %v2337_v5  ;;  %vm922_vm5 = vcmp.eq.s32.totalorder %v2822_v22, %v2679_v3 }
 0x14b   :  { %v848_v20 = vpop.permute.xlu1 %847 }
 0x14c   :  { %vm918_vm7 = vcmp.eq.s32.totalorder %v848_v20, %v2679_v3  ;;  %vm919_vm8 = vcmp.eq.s32.totalorder %v848_v20, %v2673_v63  ;;  %v3004_v43 = vpop.permute.xlu0 %1222 }
 0x14d   :  { %vm2196_vm10 = vmpackc.low %vm921_vm6, %vm919_vm8  ;;  %1231 = vperm.xlu1 %2331, %v2762_v59   ;;  %vm493_vm8 = vcmp.eq.s32.totalorder %v2644_v53, %v2664_v61 }
 0x14e   :  { %vm2198_vm11 = vmpackc.low %vm920_vm9, %vm918_vm7  ;;  %2197 = vmatprep.subr.msk.bf16.mxu0 %vm2196_vm10, %v2337_v5 }
 0x14f   :  { %2199 = vmatpush1.bf16.msk.msra.mxu0 %vm2198_vm11, %v2337_v5  ;;  %vm492_vm11 = vcmp.eq.s32.totalorder %v2644_v53, %v2655_v58 }
 0x150   :  { %v420_v32 = vpop.permute.xlu1 %419  ;;  %v3015_v6 = vpop.permute.xlu0 %63 }
 0x151   :  { %vm489_vm12 = vcmp.eq.s32.totalorder %v420_v32, %v2664_v61  ;;  %vm488_vm15 = vcmp.eq.s32.totalorder %v420_v32, %v2655_v58 }
 0x154   :  { %v423_v51 = vpop.permute.xlu1 %422  ;;  %v3026_v13 = vpop.permute.xlu0 %69 }
 0x155   :  { %vm490_vm13 = vcmp.eq.s32.totalorder %v423_v51, %v2655_v58  ;;  %vm491_vm14 = vcmp.eq.s32.totalorder %v423_v51, %v2664_v61 }
 0x156   :  { %vm2072_vm0 = vmpackc.low %vm491_vm14, %vm489_vm12  ;;  %vm929_vm14 = vcmp.eq.s32.totalorder %v2840_v4, %v2673_v63 }
 0x157   :  { %vm2074_vm1 = vmpackc.low %vm490_vm13, %vm488_vm15  ;;  %2073 = vmatprep.subr.msk.bf16.mxu1 %vm2072_vm0, %v2337_v5 }
 0x158   :  { %2075 = vmatpush1.bf16.msk.msra.mxu1 %vm2074_vm1, %v2337_v5  ;;  %vm928_vm1 = vcmp.eq.s32.totalorder %v2840_v4, %v2679_v3  ;;  %v3036_v22 = vpop.permute.xlu0 %75 }
 0x159   :  { %v857_v59 = vpop.permute.xlu1 %856 }
 0x15a   :  { %vm924_vm3 = vcmp.eq.s32.totalorder %v857_v59, %v2679_v3  ;;  %vm925_vm4 = vcmp.eq.s32.totalorder %v857_v59, %v2673_v63 }
 0x15b   :  { %vm2200_vm6 = vmpackc.low %vm925_vm4, %vm923_vm2  ;;  %vm147_vm4 = vcmp.eq.s32.totalorder %v2584_v35, %v2664_v61 }
 0x15c   :  { %vm2202_vm7 = vmpackc.low %vm924_vm3, %vm922_vm5  ;;  %2201 = vmatprep.subr.msk.bf16.mxu0 %vm2200_vm6, %v2337_v5  ;;  %vm149_vm5 = vcmp.eq.s32.totalorder %v2591_v37, %v2664_v61  ;;  %v3052_v41 = vpop.permute.xlu0 %81 }
 0x15d   :  { %2203 = vmatpush1.bf16.msk.msra.mxu0 %vm2202_vm7, %v2337_v5 }
 0x15e   :  { %v429_v15 = vpop.permute.xlu1 %428 }
 0x15f   :  { %vm494_vm9 = vcmp.eq.s32.totalorder %v429_v15, %v2655_v58  ;;  %vm495_vm10 = vcmp.eq.s32.totalorder %v429_v15, %v2664_v61 }
 0x160   :  { %vm2076_vm12 = vmpackc.low %vm495_vm10, %vm493_vm8  ;;  %vm148_vm10 = vcmp.eq.s32.totalorder %v2591_v37, %v2655_v58  ;;  %v628_v37 = vld [vmem:[%s3365_s1 + $0x10] sm:$0xff] }
 0x161   :  { %vm2078_vm13 = vmpackc.low %vm494_vm9, %vm492_vm11  ;;  %2077 = vmatprep.subr.msk.bf16.mxu1 %vm2076_vm12, %v2337_v5  ;;  %vm146_vm9 = vcmp.eq.s32.totalorder %v2584_v35, %v2655_v58  ;;  %v339_v35 = vld [vmem:[%s3365_s1 + $0x8] sm:$0xff] }
 0x162   :  { %2079 = vmatpush1.bf16.msk.msra.mxu1 %vm2078_vm13, %v2337_v5  ;;  %vm153_vm13 = vcmp.eq.s32.totalorder %v2588_v36, %v2664_v61 }
 0x163   :  { %v860_v19 = vpop.permute.xlu1 %859 }
 0x164   :  { %vm926_vm15 = vcmp.eq.s32.totalorder %v860_v19, %v2679_v3  ;;  %vm927_vm0 = vcmp.eq.s32.totalorder %v860_v19, %v2673_v63 }
 0x165   :  { %vm2204_vm2 = vmpackc.low %vm929_vm14, %vm927_vm0  ;;  %vm151_vm0 = vcmp.eq.s32.totalorder %v2581_v34, %v2664_v61 }
 0x166   :  { %vm2206_vm3 = vmpackc.low %vm928_vm1, %vm926_vm15  ;;  %2205 = vmatprep.subr.msk.bf16.mxu0 %vm2204_vm2, %v2337_v5  ;;  %vm931_vm2 = vcmp.eq.s32.totalorder %v2854_v1, %v2673_v63 }
 0x167   :  { %2207 = vmatpush1.bf16.msk.msra.mxu0 %vm2206_vm3, %v2337_v5  ;;  %vm2084_vm15 = vmpackc.low %vm149_vm5, %vm147_vm4  ;;  %vm152_vm4 = vcmp.eq.s32.totalorder %v2588_v36, %v2655_v58  ;;  %vm930_vm5 = vcmp.eq.s32.totalorder %v2854_v1, %v2679_v3  ;;  %v3082_v36 = vpop.permute.xlu0 %87 }
 0x168   :  { %v432_v53 = vpop.permute.xlu1 %431  ;;  %vm2086_vm1 = vmpackc.low %vm148_vm10, %vm146_vm9  ;;  %vm155_vm9 = vcmp.eq.s32.totalorder %v3015_v6, %v2664_v61 }
 0x169   :  { %vm497_vm6 = vcmp.eq.s32.totalorder %v432_v53, %v2664_v61  ;;  %vm496_vm11 = vcmp.eq.s32.totalorder %v432_v53, %v2655_v58 }
 0x16c   :  { %v435_v23 = vpop.permute.xlu1 %434 }
 0x16d   :  { %vm498_vm7 = vcmp.eq.s32.totalorder %v435_v23, %v2655_v58  ;;  %vm499_vm8 = vcmp.eq.s32.totalorder %v435_v23, %v2664_v61 }
 0x16e   :  { %vm2080_vm12 = vmpackc.low %vm499_vm8, %vm497_vm6 }
 0x16f   :  { %vm2082_vm14 = vmpackc.low %vm498_vm7, %vm496_vm11  ;;  %2081 = vmatprep.subr.msk.bf16.mxu1 %vm2080_vm12, %v2337_v5  ;;  %vm150_vm11 = vcmp.eq.s32.totalorder %v2581_v34, %v2655_v58  ;;  %v1426_v34 = vld [vmem:[%s3365_s1 + $0x38] sm:$0xff] }
 0x170   :  { %2083 = vmatpush1.bf16.msk.msra.mxu1 %vm2082_vm14, %v2337_v5  ;;  %vm2088_vm7 = vmpackc.low %vm153_vm13, %vm151_vm0  ;;  %vm157_vm13 = vcmp.eq.s32.totalorder %v2594_v38, %v2664_v61  ;;  %vm1234_vm14 = vcmp.eq.s32.totalorder %v2862_v55, %v2673_v63 }
 0x171   :  { %v869_v4 = vpop.permute.xlu1 %868  ;;  %2085 = vmatprep.subr.msk.bf16.mxu1 %vm2084_vm15, %v2337_v5  ;;  %vm2090_vm12 = vmpackc.low %vm152_vm4, %vm150_vm11  ;;  %vm154_vm15 = vcmp.eq.s32.totalorder %v3015_v6, %v2655_v58  ;;  %vm156_vm4 = vcmp.eq.s32.totalorder %v2594_v38, %v2655_v58  ;;  %vm158_vm11 = vcmp.eq.s32.totalorder %v3026_v13, %v2655_v58  ;;  %v3125_v38 = vpop.permute.xlu0 %93 }
 0x172   :  { %vm932_vm3 = vcmp.eq.s32.totalorder %v869_v4, %v2679_v3  ;;  %vm933_vm6 = vcmp.eq.s32.totalorder %v869_v4, %v2673_v63  ;;  %vm2092_vm0 = vmpackc.low %vm157_vm13, %vm155_vm9 }
 0x173   :  { %vm2208_vm8 = vmpackc.low %vm933_vm6, %vm931_vm2  ;;  %695 = vmatmul.mubr.f32.vlgmr.msra.gmra.mrb[0].mxu1 %v628_v37  ;;  %vm159_vm6 = vcmp.eq.s32.totalorder %v3026_v13, %v2664_v61 }
 0x174   :  { %vm2210_vm10 = vmpackc.low %vm932_vm3, %vm930_vm5  ;;  %2087 = vmatpush1.bf16.msk.msra.mxu1 %vm2086_vm1, %v2337_v5  ;;  %2209 = vmatprep.subr.msk.bf16.mxu0 %vm2208_vm8, %v2337_v5  ;;  %vm1233_vm3 = vcmp.eq.s32.totalorder %v2862_v55, %v2679_v3  ;;  %vm161_vm8 = vcmp.eq.s32.totalorder %v2600_v40, %v2664_v61 }
 0x175   :  { %2089 = vmatprep.subr.msk.bf16.mxu1 %vm2088_vm7, %v2337_v5  ;;  %2211 = vmatpush1.bf16.msk.msra.mxu0 %vm2210_vm10, %v2337_v5  ;;  %vm2094_vm9 = vmpackc.low %vm156_vm4, %vm154_vm15  ;;  %vm1240_vm10 = vcmp.eq.s32.totalorder %v2869_v25, %v2673_v63  ;;  %vm1239_vm15 = vcmp.eq.s32.totalorder %v2869_v25, %v2679_v3  ;;  %vm1244_vm4 = vcmp.eq.s32.totalorder %v2882_v12, %v2673_v63 }
 0x176   :  { %v1142_v1 = vpop.permute.xlu1 %1141  ;;  %765 = vmatprep.mubr.f32.mxu1 %v339_v35 }
 0x177   :  { %vm1235_vm1 = vcmp.eq.s32.totalorder %v1142_v1, %v2679_v3  ;;  %vm1236_vm2 = vcmp.eq.s32.totalorder %v1142_v1, %v2673_v63 }
 0x178   :  { %vm2212_vm7 = vmpackc.low %vm1236_vm2, %vm1234_vm14  ;;  %2091 = vmatpush1.bf16.msk.msra.mxu1 %vm2090_vm12, %v2337_v5  ;;  %1129 = vmatmul.mubr.f32.vlgmr.msra.gmra.mrb[0].mxu0 %v1062_v17  ;;  %vm160_vm2 = vcmp.eq.s32.totalorder %v2600_v40, %v2655_v58  ;;  %v3154_v40 = vpop.permute.xlu0 %99 }
 0x179   :  { %vm2214_vm5 = vmpackc.low %vm1235_vm1, %vm1233_vm3  ;;  %2093 = vmatprep.subr.msk.bf16.mxu1 %vm2092_vm0, %v2337_v5  ;;  %2213 = vmatprep.subr.msk.bf16.mxu0 %vm2212_vm7, %v2337_v5  ;;  %vm163_vm0 = vcmp.eq.s32.totalorder %v3036_v22, %v2664_v61 }
 0x17a   :  { %v1145_v45 = vpop.permute.xlu1 %1144  ;;  %2215 = vmatpush1.bf16.msk.msra.mxu0 %vm2214_vm5, %v2337_v5  ;;  %1491 = vmatprep.mubr.f32.mxu0 %v1426_v34  ;;  %vm2096_vm12 = vmpackc.low %vm161_vm8, %vm159_vm6  ;;  %vm165_vm6 = vcmp.eq.s32.totalorder %v2606_v42, %v2664_v61  ;;  %vm162_vm5 = vcmp.eq.s32.totalorder %v3036_v22, %v2655_v58 }
 0x17b   :  { %vm1237_vm13 = vcmp.eq.s32.totalorder %v1145_v45, %v2679_v3  ;;  %vm1238_vm14 = vcmp.eq.s32.totalorder %v1145_v45, %v2673_v63  ;;  %vm2098_vm7 = vmpackc.low %vm160_vm2, %vm158_vm11  ;;  %vm167_vm11 = vcmp.eq.s32.totalorder %v3052_v41, %v2664_v61  ;;  %vm1248_vm2 = vcmp.eq.s32.totalorder %v2898_v27, %v2673_v63 }
 0x17c   :  { %vm2216_vm1 = vmpackc.low %vm1240_vm10, %vm1238_vm14  ;;  %2095 = vmatpush1.bf16.msk.msra.mxu1 %vm2094_vm9, %v2337_v5  ;;  %vm164_vm14 = vcmp.eq.s32.totalorder %v2606_v42, %v2655_v58 }
 0x17d   :  { %vm2218_vm3 = vmpackc.low %vm1239_vm15, %vm1237_vm13  ;;  %2097 = vmatprep.subr.msk.bf16.mxu1 %vm2096_vm12, %v2337_v5  ;;  %2217 = vmatprep.subr.msk.bf16.mxu0 %vm2216_vm1, %v2337_v5  ;;  %vm1243_vm12 = vcmp.eq.s32.totalorder %v2882_v12, %v2679_v3 }
 0x17e   :  { %v1151_v8 = vpop.permute.xlu1 %1150  ;;  %2219 = vmatpush1.bf16.msk.msra.mxu0 %vm2218_vm3, %v2337_v5  ;;  %vm2100_vm8 = vmpackc.low %vm165_vm6, %vm163_vm0  ;;  %vm169_vm0 = vcmp.eq.s32.totalorder %v2613_v44, %v2664_v61  ;;  %vm166_vm3 = vcmp.eq.s32.totalorder %v3052_v41, %v2655_v58 }
 0x17f   :  { %vm1241_vm9 = vcmp.eq.s32.totalorder %v1151_v8, %v2679_v3  ;;  %vm1242_vm10 = vcmp.eq.s32.totalorder %v1151_v8, %v2673_v63  ;;  %vm2102_vm1 = vmpackc.low %vm164_vm14, %vm162_vm5  ;;  %vm171_vm5 = vcmp.eq.s32.totalorder %v3082_v36, %v2664_v61  ;;  %vm1252_vm14 = vcmp.eq.s32.totalorder %v2906_v39, %v2673_v63 }
 0x180   :  { %vm2220_vm13 = vmpackc.low %vm1244_vm4, %vm1242_vm10  ;;  %2099 = vmatpush1.bf16.msk.msra.mxu1 %vm2098_vm7, %v2337_v5  ;;  %vm168_vm10 = vcmp.eq.s32.totalorder %v2613_v44, %v2655_v58  ;;  %v3183_v44 = vpop.permute.xlu0 %105 }
 0x181   :  { %vm2222_vm15 = vmpackc.low %vm1243_vm12, %vm1241_vm9  ;;  %2101 = vmatprep.subr.msk.bf16.mxu1 %vm2100_vm8, %v2337_v5  ;;  %2221 = vmatprep.subr.msk.bf16.mxu0 %vm2220_vm13, %v2337_v5  ;;  %vm1247_vm8 = vcmp.eq.s32.totalorder %v2898_v27, %v2679_v3 }
 0x182   :  { %v1157_v55 = vpop.permute.xlu1 %1156  ;;  %2223 = vmatpush1.bf16.msk.msra.mxu0 %vm2222_vm15, %v2337_v5  ;;  %vm2104_vm6 = vmpackc.low %vm169_vm0, %vm167_vm11  ;;  %vm173_vm11 = vcmp.eq.s32.totalorder %v2620_v46, %v2664_v61  ;;  %vm170_vm15 = vcmp.eq.s32.totalorder %v3082_v36, %v2655_v58 }
 0x183   :  { %vm1245_vm7 = vcmp.eq.s32.totalorder %v1157_v55, %v2679_v3  ;;  %vm1246_vm4 = vcmp.eq.s32.totalorder %v1157_v55, %v2673_v63  ;;  %vm2106_vm13 = vmpackc.low %vm168_vm10, %vm166_vm3  ;;  %vm175_vm3 = vcmp.eq.s32.totalorder %v3125_v38, %v2664_v61  ;;  %vm1256_vm10 = vcmp.eq.s32.totalorder %v2913_v28, %v2673_v63 }
 0x184   :  { %vm2224_vm9 = vmpackc.low %vm1248_vm2, %vm1246_vm4  ;;  %2103 = vmatpush1.bf16.msk.msra.mxu1 %vm2102_vm1, %v2337_v5  ;;  %vm172_vm4 = vcmp.eq.s32.totalorder %v2620_v46, %v2655_v58  ;;  %v112_v46 = vpop.permute.xlu0 %111 }
 0x185   :  { %vm2226_vm12 = vmpackc.low %vm1247_vm8, %vm1245_vm7  ;;  %2105 = vmatprep.subr.msk.bf16.mxu1 %vm2104_vm6, %v2337_v5  ;;  %2225 = vmatprep.subr.msk.bf16.mxu0 %vm2224_vm9, %v2337_v5  ;;  %vm1251_vm6 = vcmp.eq.s32.totalorder %v2906_v39, %v2679_v3 }
 0x186   :  { %v1163_v42 = vpop.permute.xlu1 %1162  ;;  %2227 = vmatpush1.bf16.msk.msra.mxu0 %vm2226_vm12, %v2337_v5  ;;  %vm2108_vm0 = vmpackc.low %vm173_vm11, %vm171_vm5  ;;  %vm177_vm5 = vcmp.eq.s32.totalorder %v2627_v48, %v2664_v61  ;;  %vm174_vm12 = vcmp.eq.s32.totalorder %v3125_v38, %v2655_v58 }
 0x187   :  { %vm1249_vm1 = vcmp.eq.s32.totalorder %v1163_v42, %v2679_v3  ;;  %vm1250_vm2 = vcmp.eq.s32.totalorder %v1163_v42, %v2673_v63  ;;  %vm2110_vm9 = vmpackc.low %vm172_vm4, %vm170_vm15  ;;  %vm179_vm15 = vcmp.eq.s32.totalorder %v3154_v40, %v2664_v61  ;;  %vm1260_vm4 = vcmp.eq.s32.totalorder %v2927_v18, %v2673_v63 }
 0x188   :  { %vm2228_vm7 = vmpackc.low %vm1252_vm14, %vm1250_vm2  ;;  %2107 = vmatpush1.bf16.msk.msra.mxu1 %vm2106_vm13, %v2337_v5  ;;  %vm176_vm2 = vcmp.eq.s32.totalorder %v2627_v48, %v2655_v58 }
 0x189   :  { %vm2230_vm8 = vmpackc.low %vm1251_vm6, %vm1249_vm1  ;;  %2109 = vmatprep.subr.msk.bf16.mxu1 %vm2108_vm0, %v2337_v5  ;;  %2229 = vmatprep.subr.msk.bf16.mxu0 %vm2228_vm7, %v2337_v5  ;;  %vm1255_vm0 = vcmp.eq.s32.totalorder %v2913_v28, %v2679_v3 }
 0x18a   :  { %v1169_v21 = vpop.permute.xlu1 %1168  ;;  %2231 = vmatpush1.bf16.msk.msra.mxu0 %vm2230_vm8, %v2337_v5  ;;  %vm2112_vm11 = vmpackc.low %vm177_vm5, %vm175_vm3  ;;  %vm181_vm3 = vcmp.eq.s32.totalorder %v2633_v50, %v2664_v61  ;;  %vm178_vm8 = vcmp.eq.s32.totalorder %v3154_v40, %v2655_v58 }
 0x18b   :  { %vm1253_vm13 = vcmp.eq.s32.totalorder %v1169_v21, %v2679_v3  ;;  %vm1254_vm14 = vcmp.eq.s32.totalorder %v1169_v21, %v2673_v63  ;;  %vm2114_vm7 = vmpackc.low %vm176_vm2, %vm174_vm12  ;;  %vm183_vm12 = vcmp.eq.s32.totalorder %v3183_v44, %v2664_v61  ;;  %vm1264_vm2 = vcmp.eq.s32.totalorder %v2939_v62, %v2673_v63 }
 0x18c   :  { %vm2232_vm1 = vmpackc.low %vm1256_vm10, %vm1254_vm14  ;;  %2111 = vmatpush1.bf16.msk.msra.mxu1 %vm2110_vm9, %v2337_v5  ;;  %vm180_vm14 = vcmp.eq.s32.totalorder %v2633_v50, %v2655_v58  ;;  %v118_v50 = vpop.permute.xlu0 %117 }
 0x18d   :  { %vm2234_vm6 = vmpackc.low %vm1255_vm0, %vm1253_vm13  ;;  %2113 = vmatprep.subr.msk.bf16.mxu1 %vm2112_vm11, %v2337_v5  ;;  %2233 = vmatprep.subr.msk.bf16.mxu0 %vm2232_vm1, %v2337_v5  ;;  %vm1259_vm11 = vcmp.eq.s32.totalorder %v2927_v18, %v2679_v3 }
 0x18e   :  { %v1175_v25 = vpop.permute.xlu1 %1174  ;;  %2235 = vmatpush1.bf16.msk.msra.mxu0 %vm2234_vm6, %v2337_v5  ;;  %vm2116_vm5 = vmpackc.low %vm181_vm3, %vm179_vm15  ;;  %vm185_vm15 = vcmp.eq.s32.totalorder %v2639_v52, %v2664_v61  ;;  %vm182_vm6 = vcmp.eq.s32.totalorder %v3183_v44, %v2655_v58 }
 0x18f   :  { %vm1257_vm9 = vcmp.eq.s32.totalorder %v1175_v25, %v2679_v3  ;;  %vm1258_vm10 = vcmp.eq.s32.totalorder %v1175_v25, %v2673_v63  ;;  %vm2118_vm1 = vmpackc.low %vm180_vm14, %vm178_vm8  ;;  %vm187_vm8 = vcmp.eq.s32.totalorder %v112_v46, %v2664_v61  ;;  %vm1268_vm14 = vcmp.eq.s32.totalorder %v2951_v49, %v2673_v63 }
 0x190   :  { %vm2236_vm13 = vmpackc.low %vm1260_vm4, %vm1258_vm10  ;;  %2115 = vmatpush1.bf16.msk.msra.mxu1 %vm2114_vm7, %v2337_v5  ;;  %vm184_vm10 = vcmp.eq.s32.totalorder %v2639_v52, %v2655_v58  ;;  %v124_v52 = vpop.permute.xlu0 %123 }
 0x191   :  { %vm2238_vm0 = vmpackc.low %vm1259_vm11, %vm1257_vm9  ;;  %2117 = vmatprep.subr.msk.bf16.mxu1 %vm2116_vm5, %v2337_v5  ;;  %2237 = vmatprep.subr.msk.bf16.mxu0 %vm2236_vm13, %v2337_v5  ;;  %vm1263_vm5 = vcmp.eq.s32.totalorder %v2939_v62, %v2679_v3 }
 0x192   :  { %v1181_v48 = vpop.permute.xlu1 %1180  ;;  %2239 = vmatpush1.bf16.msk.msra.mxu0 %vm2238_vm0, %v2337_v5  ;;  %vm2120_vm3 = vmpackc.low %vm185_vm15, %vm183_vm12  ;;  %vm189_vm12 = vcmp.eq.s32.totalorder %v2646_v54, %v2664_v61  ;;  %vm186_vm0 = vcmp.eq.s32.totalorder %v112_v46, %v2655_v58 }
 0x193   :  { %vm1261_vm7 = vcmp.eq.s32.totalorder %v1181_v48, %v2679_v3  ;;  %vm1262_vm4 = vcmp.eq.s32.totalorder %v1181_v48, %v2673_v63  ;;  %vm2122_vm13 = vmpackc.low %vm184_vm10, %vm182_vm6  ;;  %vm188_vm6 = vcmp.eq.s32.totalorder %v2646_v54, %v2655_v58  ;;  %vm1272_vm10 = vcmp.eq.s32.totalorder %v2960_v24, %v2673_v63 }
 0x194   :  { %vm2240_vm9 = vmpackc.low %vm1264_vm2, %vm1262_vm4  ;;  %2119 = vmatpush1.bf16.msk.msra.mxu1 %vm2118_vm1, %v2337_v5  ;;  %v133_v26 = vpop.permute.xlu0 %132 }
 0x195   :  { %vm2242_vm11 = vmpackc.low %vm1263_vm5, %vm1261_vm7  ;;  %2121 = vmatprep.subr.msk.bf16.mxu1 %vm2120_vm3, %v2337_v5  ;;  %2241 = vmatprep.subr.msk.bf16.mxu0 %vm2240_vm9, %v2337_v5  ;;  %vm1267_vm3 = vcmp.eq.s32.totalorder %v2951_v49, %v2679_v3  ;;  %vm191_vm7 = vcmp.eq.s32.totalorder %v118_v50, %v2664_v61 }
 0x196   :  { %v1187_v10 = vpop.permute.xlu1 %1186  ;;  %2243 = vmatpush1.bf16.msk.msra.mxu0 %vm2242_vm11, %v2337_v5  ;;  %vm2124_vm15 = vmpackc.low %vm189_vm12, %vm187_vm8  ;;  %vm193_vm8 = vcmp.eq.s32.totalorder %v2651_v57, %v2664_v61  ;;  %vm190_vm11 = vcmp.eq.s32.totalorder %v118_v50, %v2655_v58 }
 0x197   :  { %vm1265_vm1 = vcmp.eq.s32.totalorder %v1187_v10, %v2679_v3  ;;  %vm1266_vm2 = vcmp.eq.s32.totalorder %v1187_v10, %v2673_v63  ;;  %vm2126_vm9 = vmpackc.low %vm188_vm6, %vm186_vm0  ;;  %vm192_vm0 = vcmp.eq.s32.totalorder %v2651_v57, %v2655_v58  ;;  %vm1276_vm6 = vcmp.eq.s32.totalorder %v2974_v31, %v2673_v63 }
 0x198   :  { %vm2244_vm4 = vmpackc.low %vm1268_vm14, %vm1266_vm2  ;;  %2123 = vmatpush1.bf16.msk.msra.mxu1 %vm2122_vm13, %v2337_v5  ;;  %v136_v39 = vpop.permute.xlu0 %135 }
 0x199   :  { %vm2246_vm5 = vmpackc.low %vm1267_vm3, %vm1265_vm1  ;;  %2125 = vmatprep.subr.msk.bf16.mxu1 %vm2124_vm15, %v2337_v5  ;;  %2245 = vmatprep.subr.msk.bf16.mxu0 %vm2244_vm4, %v2337_v5  ;;  %vm1271_vm15 = vcmp.eq.s32.totalorder %v2960_v24, %v2679_v3  ;;  %vm195_vm1 = vcmp.eq.s32.totalorder %v124_v52, %v2664_v61 }
 0x19a   :  { %v1193_v12 = vpop.permute.xlu1 %1192  ;;  %2247 = vmatpush1.bf16.msk.msra.mxu0 %vm2246_vm5, %v2337_v5  ;;  %vm2128_vm12 = vmpackc.low %vm193_vm8, %vm191_vm7  ;;  %vm197_vm7 = vcmp.eq.s32.totalorder %v2660_v60, %v2664_v61 }
 0x19b   :  { %vm1269_vm13 = vcmp.eq.s32.totalorder %v1193_v12, %v2679_v3  ;;  %vm1270_vm14 = vcmp.eq.s32.totalorder %v1193_v12, %v2673_v63  ;;  %vm2130_vm4 = vmpackc.low %vm192_vm0, %vm190_vm11 }
 0x19c   :  { %vm2248_vm2 = vmpackc.low %vm1272_vm10, %vm1270_vm14  ;;  %2127 = vmatpush1.bf16.msk.msra.mxu1 %vm2126_vm9, %v2337_v5  ;;  %vm1275_vm10 = vcmp.eq.s32.totalorder %v2974_v31, %v2679_v3  ;;  %vm196_vm14 = vcmp.eq.s32.totalorder %v2660_v60, %v2655_v58  ;;  %v145_v16 = vpop.permute.xlu0 %144 }
 0x19d   :  { %vm2250_vm3 = vmpackc.low %vm1271_vm15, %vm1269_vm13  ;;  %2129 = vmatprep.subr.msk.bf16.mxu1 %vm2128_vm12, %v2337_v5  ;;  %2249 = vmatprep.subr.msk.bf16.mxu0 %vm2248_vm2, %v2337_v5  ;;  %vm194_vm12 = vcmp.eq.s32.totalorder %v124_v52, %v2655_v58  ;;  %vm1280_vm15 = vcmp.eq.s32.totalorder %v2986_v0, %v2673_v63 }
 0x19e   :  { %v1199_v54 = vpop.permute.xlu1 %1198  ;;  %2251 = vmatpush1.bf16.msk.msra.mxu0 %vm2250_vm3, %v2337_v5  ;;  %vm2132_vm5 = vmpackc.low %vm197_vm7, %vm195_vm1  ;;  %vm1279_vm3 = vcmp.eq.s32.totalorder %v2986_v0, %v2679_v3 }
 0x19f   :  { %vm1273_vm8 = vcmp.eq.s32.totalorder %v1199_v54, %v2679_v3  ;;  %vm1274_vm9 = vcmp.eq.s32.totalorder %v1199_v54, %v2673_v63  ;;  %vm2134_vm1 = vmpackc.low %vm196_vm14, %vm194_vm12 }
 0x1a0   :  { %vm2252_vm13 = vmpackc.low %vm1276_vm6, %vm1274_vm9  ;;  %2131 = vmatpush1.bf16.msk.msra.mxu1 %vm2130_vm4, %v2337_v5  ;;  %vm1284_vm6 = vcmp.eq.s32.totalorder %v2998_v33, %v2673_v63  ;;  %vm1283_vm9 = vcmp.eq.s32.totalorder %v2998_v33, %v2679_v3 }
 0x1a1   :  { %vm2254_vm11 = vmpackc.low %vm1275_vm10, %vm1273_vm8  ;;  %2133 = vmatprep.subr.msk.bf16.mxu1 %vm2132_vm5, %v2337_v5  ;;  %2253 = vmatprep.subr.msk.bf16.mxu0 %vm2252_vm13, %v2337_v5  ;;  %vm201_vm13 = vcmp.eq.s32.totalorder %v133_v26, %v2664_v61 }
 0x1a2   :  { %v1205_v57 = vpop.permute.xlu1 %1204  ;;  %2255 = vmatpush1.bf16.msk.msra.mxu0 %vm2254_vm11, %v2337_v5 }
 0x1a3   :  { %vm1277_vm2 = vcmp.eq.s32.totalorder %v1205_v57, %v2679_v3  ;;  %vm1278_vm0 = vcmp.eq.s32.totalorder %v1205_v57, %v2673_v63 }
 0x1a4   :  { %vm2256_vm7 = vmpackc.low %vm1280_vm15, %vm1278_vm0  ;;  %2135 = vmatpush1.bf16.msk.msra.mxu1 %vm2134_vm1, %v2337_v5  ;;  %vm200_vm15 = vcmp.eq.s32.totalorder %v133_v26, %v2655_v58 }
 0x1a5   :  { %vm2258_vm4 = vmpackc.low %vm1279_vm3, %vm1277_vm2  ;;  %2257 = vmatprep.subr.msk.bf16.mxu0 %vm2256_vm7, %v2337_v5 }
 0x1a6   :  { %v1211_v60 = vpop.permute.xlu1 %1210  ;;  %2259 = vmatpush1.bf16.msk.msra.mxu0 %vm2258_vm4, %v2337_v5 }
 0x1a7   :  { %vm1281_vm5 = vcmp.eq.s32.totalorder %v1211_v60, %v2679_v3  ;;  %vm1282_vm8 = vcmp.eq.s32.totalorder %v1211_v60, %v2673_v63 }
 0x1a8   :  { %vm2260_vm10 = vmpackc.low %vm1284_vm6, %vm1282_vm8  ;;  %vm203_vm8 = vcmp.eq.s32.totalorder %v136_v39, %v2664_v61 }
 0x1a9   :  { %vm2262_vm12 = vmpackc.low %vm1283_vm9, %vm1281_vm5  ;;  %2261 = vmatprep.subr.msk.bf16.mxu0 %vm2260_vm10, %v2337_v5 }
 0x1aa   :  { %2263 = vmatpush1.bf16.msk.msra.mxu0 %vm2262_vm12, %v2337_v5  ;;  %vm202_vm12 = vcmp.eq.s32.totalorder %v136_v39, %v2655_v58 }
 0x1ab   :  { %v130_v27 = vpop.permute.xlu1 %129 }
 0x1ac   :  { %vm198_vm11 = vcmp.eq.s32.totalorder %v130_v27, %v2655_v58  ;;  %vm199_vm14 = vcmp.eq.s32.totalorder %v130_v27, %v2664_v61 }
 0x1ad   :  { %vm2136_vm1 = vmpackc.low %vm201_vm13, %vm199_vm14  ;;  %vm1290_vm14 = vcmp.eq.s32.totalorder %v3004_v43, %v2673_v63 }
 0x1ae   :  { %vm2138_vm2 = vmpackc.low %vm200_vm15, %vm198_vm11  ;;  %2137 = vmatprep.subr.msk.bf16.mxu1 %vm2136_vm1, %v2337_v5 }
 0x1af   :  { %2139 = vmatpush1.bf16.msk.msra.mxu1 %vm2138_vm2, %v2337_v5  ;;  %vm1289_vm2 = vcmp.eq.s32.totalorder %v3004_v43, %v2679_v3 }
 0x1b0   :  { %v1217_v14 = vpop.permute.xlu1 %1216 }
 0x1b1   :  { %vm1286_vm0 = vcmp.eq.s32.totalorder %v1217_v14, %v2673_v63  ;;  %vm1285_vm4 = vcmp.eq.s32.totalorder %v1217_v14, %v2679_v3 }
 0x1b4   :  { %v1220_v47 = vpop.permute.xlu1 %1219 }
 0x1b5   :  { %vm1287_vm3 = vcmp.eq.s32.totalorder %v1220_v47, %v2679_v3  ;;  %vm1288_vm7 = vcmp.eq.s32.totalorder %v1220_v47, %v2673_v63 }
 0x1b6   :  { %vm2264_vm6 = vmpackc.low %vm1288_vm7, %vm1286_vm0  ;;  %vm209_vm7 = vcmp.eq.s32.totalorder %v145_v16, %v2664_v61 }
 0x1b7   :  { %vm2266_vm5 = vmpackc.low %vm1287_vm3, %vm1285_vm4  ;;  %2265 = vmatprep.subr.msk.bf16.mxu0 %vm2264_vm6, %v2337_v5 }
 0x1b8   :  { %2267 = vmatpush1.bf16.msk.msra.mxu0 %vm2266_vm5, %v2337_v5  ;;  %vm208_vm5 = vcmp.eq.s32.totalorder %v145_v16, %v2655_v58 }
 0x1b9   :  { %v139_v56 = vpop.permute.xlu1 %138 }
 0x1ba   :  { %vm204_vm9 = vcmp.eq.s32.totalorder %v139_v56, %v2655_v58  ;;  %vm205_vm10 = vcmp.eq.s32.totalorder %v139_v56, %v2664_v61 }
 0x1bb   :  { %vm2140_vm13 = vmpackc.low %vm205_vm10, %vm203_vm8 }
 0x1bc   :  { %vm2142_vm11 = vmpackc.low %vm204_vm9, %vm202_vm12  ;;  %2141 = vmatprep.subr.msk.bf16.mxu1 %vm2140_vm13, %v2337_v5 }
 0x1bd   :  { %2143 = vmatpush1.bf16.msk.msra.mxu1 %vm2142_vm11, %v2337_v5 }
 0x1be   :  { %v1226_v28 = vpop.permute.xlu1 %1225 }
 0x1bf   :  { %vm1291_vm15 = vcmp.eq.s32.totalorder %v1226_v28, %v2679_v3  ;;  %vm1292_vm1 = vcmp.eq.s32.totalorder %v1226_v28, %v2673_v63 }
 0x1c0   :  { %vm2268_vm0 = vmpackc.low %vm1292_vm1, %vm1290_vm14 }
 0x1c1   :  { %vm2270_vm3 = vmpackc.low %vm1291_vm15, %vm1289_vm2  ;;  %2269 = vmatprep.subr.msk.bf16.mxu0 %vm2268_vm0, %v2337_v5 }
 0x1c2   :  { %2271 = vmatpush1.bf16.msk.msra.mxu0 %vm2270_vm3, %v2337_v5 }
 0x1c3   :  { %v142_v18 = vpop.permute.xlu1 %141 }
 0x1c4   :  { %vm206_vm4 = vcmp.eq.s32.totalorder %v142_v18, %v2655_v58  ;;  %vm207_vm6 = vcmp.eq.s32.totalorder %v142_v18, %v2664_v61  ;;  %v1425_v58 = vld [vmem:[%s3365_s1 + $0x30] sm:$0xff] }
 0x1c5   :  { %vm2144_vm8 = vmpackc.low %vm209_vm7, %vm207_vm6 }
 0x1c6   :  { %vm2146_vm9 = vmpackc.low %vm208_vm5, %vm206_vm4  ;;  %2145 = vmatprep.subr.msk.bf16.mxu1 %vm2144_vm8, %v2337_v5 }
 0x1c7   :  { %2147 = vmatpush1.bf16.msk.msra.mxu1 %vm2146_vm9, %v2337_v5 }
 0x1c8   :  { %v1229_v62 = vpop.permute.xlu1 %1228 }
 0x1c9   :  { %vm1294_vm10 = vcmp.eq.s32.totalorder %v1229_v62, %v2673_v63  ;;  %vm1293_vm11 = vcmp.eq.s32.totalorder %v1229_v62, %v2679_v3 }
 0x1ca   :  { %766 = vmatmul.mubr.f32.vlgmr.msra.gmra.mrb[0].mxu1 %v338_v29 }
 0x1cc   :  { %v1232_v2 = vpop.permute.xlu1 %1231 }
 0x1cd   :  { %vm1295_vm12 = vcmp.eq.s32.totalorder %v1232_v2, %v2679_v3  ;;  %vm1296_vm13 = vcmp.eq.s32.totalorder %v1232_v2, %v2673_v63 }
 0x1ce   :  { %vm2272_vm14 = vmpackc.low %vm1296_vm13, %vm1294_vm10 }
 0x1cf   :  { %vm2274_vm15 = vmpackc.low %vm1295_vm12, %vm1293_vm11  ;;  %2273 = vmatprep.subr.msk.bf16.mxu0 %vm2272_vm14, %v2337_v5 }
 0x1d0   :  { %2275 = vmatpush1.bf16.msk.msra.mxu0 %vm2274_vm15, %v2337_v5 }
 0x1d3   :  { %1492 = vmatmul.mubr.f32.vlgmr.msra.gmra.mrb[0].mxu0 %v1425_v58 }
 0x29d   :  { %v767_v61 = vpop.f32.mrb[0].mxu1 }
 0x29e   :  { %v769_v30 = vpop.f32.mrb[1].mxu1 }
 0x2a6   :  { %v1493_v49 = vpop.f32.mrb[0].mxu0 }
 0x2a7   :  { %v2276_v9 = vadd.f32 %v1493_v49, %v767_v61  ;;  %v1495_v24 = vpop.f32.mrb[1].mxu0 }
 0x2a8   :  { %v2277_v11 = vadd.f32 %v1495_v24, %v769_v30 }
 0x2a9   :  { %1500 = vst [vmem:[%s3366_s2] sm:$0xff] %v2276_v9 }
 0x2aa   :  { %1501 = vst [vmem:[%s3366_s2 + $0x8] sm:$0xff] %v2277_v11 }

</bundles_post_ra>
